<compile_context>
chip_gen: v7x
topology: tpu7x:2x2x1
jax: 0.10.0
libtpu: 0.0.40
codegen_flags: <defaults>
</compile_context>

<pallas_src>
import functools

import jax
import jax.numpy as jnp
from jax.experimental import pallas as pl
from jax.experimental.pallas import tpu as pltpu

# 3x3 tap offsets (dh-1, dw-1), row-major — must match the weight packing.
_TAPS = tuple((a, b) for a in (-1, 0, 1) for b in (-1, 0, 1))


def _num_tensorcores_per_device():
    """Heuristic: 2 TCs per device on megacore-class chips, else 1."""
    try:
        kind = jax.devices()[0].device_kind.lower()
    except Exception:  # pragma: no cover - defensive
        return 1
    return 2 if ("v7" in kind or "v4" in kind) else 1


def _fused_kernel(x_ref, w_ref, p_ref, o_ref, *, H, W, C, S, eps):
    """One grid step: S samples of conv3x3 + GroupNorm(1 group) + PReLU.

    x_ref: (1, S*C, H*W)   activations, spatial flattened onto lanes,
                           S samples stacked on sublanes
    w_ref: (S*C, 9*S*C)    per-tap block-diagonal conv weights;
                           column t*R+j holds wbig[t][:, j]
    p_ref: (C, 3)          packed per-channel params [gamma | beta | alpha]
    o_ref: (1, S*C, H*W)   output
    """
    HW = H * W
    R = S * C
    x = x_ref[0]                                      # (R, HW) f32

    # --- in-kernel halo masks (no mask DMA): flat index p = h*W + w ---
    lane = jax.lax.broadcasted_iota(jnp.int32, (R, HW), 1)
    col = lane % W
    top_ok = lane >= W                                # h - 1 >= 0
    bot_ok = lane < (H - 1) * W                       # h + 1 <= H - 1
    left_ok = col >= 1                                # w - 1 >= 0
    right_ok = col <= W - 2                           # w + 1 <= W - 1

    def tap_mask(a, b):
        m = None
        if a == -1:
            m = top_ok
        elif a == 1:
            m = bot_ok
        if b == -1:
            m = left_ok if m is None else (m & left_ok)
        elif b == 1:
            m = right_ok if m is None else (m & right_ok)
        return m

    # --- 3x3 conv: 9 lane-rolled taps (XLU), channel contraction on the VPU
    #     via broadcast FMAs with per-sample block-diagonal weights. ---
    npart = min(4, R)
    partial = [jnp.zeros((R, HW), jnp.float32) for _ in range(npart)]
    for t, (a, b) in enumerate(_TAPS):
        s = a * W + b                                 # flat-index offset of this tap
        if s == 0:
            sh = x
        else:
            # sh[p] = x[(p + s) mod HW]  (XLU lane rotation), then zero the
            # positions whose (h+a, w+b) source falls in the padding halo.
            sh = pltpu.roll(x, (HW - s) % HW, axis=1)
            sh = jnp.where(tap_mask(a, b), sh, 0.0)
        for j in range(R):
            k = t * R + j
            # (R,1) weight column x (1,HW) source row -> (R,HW) contribution
            partial[j % npart] = partial[j % npart] + w_ref[:, k:k + 1] * sh[j:j + 1, :]
    acc = functools.reduce(jnp.add, partial)          # (R, HW) conv output

    # --- GroupNorm(num_groups=1) per sample + per-channel PReLU ---
    gamma = p_ref[:, 0:1]                             # (C, 1)
    beta = p_ref[:, 1:2]
    alpha = p_ref[:, 2:3]

    ys = []
    for si in range(S):
        blk = acc[si * C:(si + 1) * C, :]             # (C, HW) static slice
        mean = jnp.mean(blk)
        centered = blk - mean                         # reused for var and normalize
        var = jnp.mean(centered * centered)
        scale = gamma * jax.lax.rsqrt(var + eps)      # fold rstd into the affine
        y = centered * scale + beta
        y = jnp.where(y > 0, y, alpha * y)            # per-channel PReLU
        ys.append(y)
    o_ref[0] = jnp.concatenate(ys, axis=0).astype(o_ref.dtype)


def standard_conv_layers_forward(x_nchw, w_oihw, gamma, beta, alpha, *,
                                 eps=1e-5, n_steps=None):
    """x_nchw: (B, C, H, W) float32. Returns (B, C, H, W) float32."""
    B, C, H, W = x_nchw.shape
    HW = H * W

    # Grid sizing: one fat step on single-TC chips, two parallel steps on
    # 2-TC chips so the batch is split across cores.
    if n_steps is None:
        n_steps = min(B, _num_tensorcores_per_device())
    n_steps = max(1, min(int(n_steps), B))
    S = -(-B // n_steps)                              # samples per grid step
    B_pad = n_steps * S
    R = S * C

    # Free re-layout: NCHW is contiguous, so (n_steps, S*C, HW) is a reshape
    # (no transpose / pad HBM round trips over the activation).
    x_flat = x_nchw.reshape(B, C, HW)
    if B_pad != B:
        x_flat = jnp.concatenate(
            [x_flat, jnp.zeros((B_pad - B, C, HW), x_flat.dtype)], axis=0)
    x_blk = x_flat.reshape(n_steps, R, HW)

    # Weights: (O, I, 3, 3) -> per-tap (C, C) -> per-sample block-diagonal
    # (R, R) -> packed (R, 9*R); column t*R+j = wbig[t][:, j].  Tiny array;
    # input-independent (hoisted under jit).
    w_tap = jnp.transpose(w_oihw, (2, 3, 0, 1)).reshape(9, C, C)
    eye_s = jnp.eye(S, dtype=jnp.float32)
    wbig = jnp.stack([jnp.kron(eye_s, w_tap[t].astype(jnp.float32))
                      for t in range(9)], axis=0)                      # (9, R, R)
    w_packed = jnp.transpose(wbig, (1, 0, 2)).reshape(R, 9 * R)

    # Pack the three per-channel parameter vectors into one small block.
    params = jnp.stack([gamma, beta, alpha], axis=1).astype(jnp.float32)  # (C, 3)

    kernel = functools.partial(_fused_kernel, H=H, W=W, C=C, S=S, eps=eps)

    out_blk = pl.pallas_call(
        kernel,
        out_shape=jax.ShapeDtypeStruct((n_steps, R, HW), jnp.float32),
        grid_spec=pltpu.PrefetchScalarGridSpec(
            num_scalar_prefetch=0,
            grid=(n_steps,),
            in_specs=[
                pl.BlockSpec((1, R, HW), lambda b: (b, 0, 0)),
                pl.BlockSpec((R, 9 * R), lambda b: (0, 0)),
                pl.BlockSpec((C, 3), lambda b: (0, 0)),
            ],
            out_specs=pl.BlockSpec((1, R, HW), lambda b: (b, 0, 0)),
        ),
        compiler_params=pltpu.CompilerParams(
            dimension_semantics=("parallel",)),
    )(x_blk, w_packed, params)

    out = out_blk.reshape(B_pad, C, H, W)
    if B_pad != B:
        out = out[:B]
    return out


def _reference_forward(x_nchw, w_oihw, gamma, beta, alpha, *, eps=1e-5):
    """Pure-JAX reference matching PyTorch semantics (for verification)."""
    y = jax.lax.conv_general_dilated(
        x_nchw, w_oihw, window_strides=(1, 1), padding=((1, 1), (1, 1)),
        dimension_numbers=("NCHW", "OIHW", "NCHW"))
    mean = jnp.mean(y, axis=(1, 2, 3), keepdims=True)
    var = jnp.var(y, axis=(1, 2, 3), keepdims=True)
    yn = (y - mean) * jax.lax.rsqrt(var + eps)
    yn = yn * gamma[None, :, None, None] + beta[None, :, None, None]
    return jnp.where(yn > 0, yn, alpha[None, :, None, None] * yn)


if __name__ == "__main__":
    B, C, H, W = 2, 4, 16, 16

    key = jax.random.PRNGKey(0)
    kx, kw = jax.random.split(key)

    x = jax.random.normal(kx, (B, C, H, W), dtype=jnp.float32)

    # Deterministic parameter init (shapes from the module's __init__):
    #   conv_1.weight: (C, C, 3, 3), no bias
    #   norm.weight=1, norm.bias=0 (GroupNorm defaults)
    #   act.weight=0.25 per channel (PReLU default)
    fan_in = C * 3 * 3
    bound = 1.0 / (fan_in ** 0.5)
    w_conv1 = jax.random.uniform(kw, (C, C, 3, 3), jnp.float32, -bound, bound)
    gamma = jnp.ones((C,), jnp.float32)
    beta = jnp.zeros((C,), jnp.float32)
    alpha = jnp.full((C,), 0.25, jnp.float32)

    fwd = jax.jit(standard_conv_layers_forward)   # hoists constant prep per-compile
    out = jax.block_until_ready(fwd(x, w_conv1, gamma, beta, alpha))

    ref = _reference_forward(x, w_conv1, gamma, beta, alpha)
    assert out.shape == (B, C, H, W)
    assert jnp.allclose(out, ref, atol=1e-5, rtol=1e-5), "mismatch vs JAX reference"

    print("KERNEL_OK")
</pallas_src>

<mosaic_0001>
module attributes {stable_mosaic.version = 11 : i64} {
  func.func @_fused_kernel(%arg0: i32, %arg1: memref<1x8x256xf32, #tpu.memory_space<vmem>>, %arg2: memref<8x72xf32, #tpu.memory_space<vmem>>, %arg3: memref<4x3xf32, #tpu.memory_space<vmem>>, %arg4: memref<1x8x256xf32, #tpu.memory_space<vmem>>) attributes {dimension_semantics = [#tpu.dimension_semantics<parallel>], iteration_bounds = array<i64: 1>, scalar_prefetch = 0 : i64, scratch_operands = 0 : i64, tpu.core_type = #tpu.core_type<tc>, window_params = [{transform_indices = @transform_0, window_bounds = array<i64: 1, 8, 256>}, {pipeline_mode = #tpu.pipeline_mode<synchronous>, transform_indices = @transform_1, window_bounds = array<i64: 8, 72>}, {pipeline_mode = #tpu.pipeline_mode<synchronous>, transform_indices = @transform_2, window_bounds = array<i64: 4, 3>}, {transform_indices = @transform_3, window_bounds = array<i64: 1, 8, 256>}]} {
    %c0 = arith.constant 0 : index
    %c0_0 = arith.constant 0 : index
    %c0_1 = arith.constant 0 : index
    %0 = vector.load %arg1[%c0, %c0_0, %c0_1] : memref<1x8x256xf32, #tpu.memory_space<vmem>>, vector<1x8x256xf32>
    %1 = vector.shape_cast %0 : vector<1x8x256xf32> to vector<8x256xf32>
    %2 = tpu.iota {dimensions = array<i32: 1>} : vector<8x256xi32>
    %c16_i32 = arith.constant 16 : i32
    %c0_i32 = arith.constant 0 : i32
    %3 = arith.cmpi eq, %c16_i32, %c0_i32 : i32
    %c1_i32 = arith.constant 1 : i32
    %4 = arith.select %3, %c1_i32, %c16_i32 : i32
    %5 = vector.broadcast %4 : i32 to vector<8x256xi32>
    %6 = arith.remsi %2, %5 : vector<8x256xi32>
    %c0_i32_2 = arith.constant 0 : i32
    %7 = vector.broadcast %c0_i32_2 : i32 to vector<8x256xi32>
    %8 = arith.cmpi ne, %6, %7 : vector<8x256xi32>
    %c0_i32_3 = arith.constant 0 : i32
    %9 = vector.broadcast %c0_i32_3 : i32 to vector<8x256xi32>
    %10 = arith.cmpi slt, %6, %9 : vector<8x256xi32>
    %c0_i32_4 = arith.constant 0 : i32
    %11 = arith.cmpi slt, %4, %c0_i32_4 : i32
    %12 = vector.broadcast %11 : i1 to vector<8x256xi1>
    %13 = vector.broadcast %12 : vector<8x256xi1> to vector<8x256xi1>
    %14 = arith.xori %10, %13 : vector<8x256xi1>
    %15 = arith.andi %14, %8 : vector<8x256xi1>
    %16 = vector.broadcast %4 : i32 to vector<8x256xi32>
    %17 = arith.addi %6, %16 : vector<8x256xi32>
    %18 = arith.select %15, %17, %6 : vector<8x256xi1>, vector<8x256xi32>
    %c16_i32_5 = arith.constant 16 : i32
    %19 = vector.broadcast %c16_i32_5 : i32 to vector<8x256xi32>
    %20 = arith.cmpi sge, %2, %19 : vector<8x256xi32>
    %c240_i32 = arith.constant 240 : i32
    %21 = vector.broadcast %c240_i32 : i32 to vector<8x256xi32>
    %22 = arith.cmpi slt, %2, %21 : vector<8x256xi32>
    %c1_i32_6 = arith.constant 1 : i32
    %23 = vector.broadcast %c1_i32_6 : i32 to vector<8x256xi32>
    %24 = arith.cmpi sge, %18, %23 : vector<8x256xi32>
    %c14_i32 = arith.constant 14 : i32
    %25 = vector.broadcast %c14_i32 : i32 to vector<8x256xi32>
    %26 = arith.cmpi sle, %18, %25 : vector<8x256xi32>
    %cst = arith.constant 0.000000e+00 : f32
    %27 = vector.broadcast %cst : f32 to vector<8x256xf32>
    %cst_7 = arith.constant 0.000000e+00 : f32
    %28 = vector.broadcast %cst_7 : f32 to vector<8x256xf32>
    %cst_8 = arith.constant 0.000000e+00 : f32
    %29 = vector.broadcast %cst_8 : f32 to vector<8x256xf32>
    %cst_9 = arith.constant 0.000000e+00 : f32
    %30 = vector.broadcast %cst_9 : f32 to vector<8x256xf32>
    %c17_i32 = arith.constant 17 : i32
    %31 = tpu.dynamic_rotate %1 by %c17_i32 dim 1 : vector<8x256xf32>, i32 -> vector<8x256xf32>
    %32 = arith.andi %20, %24 : vector<8x256xi1>
    %cst_10 = arith.constant 0.000000e+00 : f32
    %33 = vector.broadcast %cst_10 : f32 to vector<8x256xf32>
    %34 = arith.select %32, %31, %33 : vector<8x256xi1>, vector<8x256xf32>
    %c0_11 = arith.constant 0 : index
    %c0_12 = arith.constant 0 : index
    %35 = vector.load %arg2[%c0_11, %c0_12] : memref<8x72xf32, #tpu.memory_space<vmem>>, vector<8x1xf32>
    %36 = vector.extract_strided_slice %34 {offsets = [0, 0], sizes = [1, 256], strides = [1, 1]} : vector<8x256xf32> to vector<1x256xf32>
    %37 = vector.broadcast %35 : vector<8x1xf32> to vector<8x256xf32>
    %38 = vector.broadcast %36 : vector<1x256xf32> to vector<8x256xf32>
    %39 = arith.mulf %37, %38 : vector<8x256xf32>
    %40 = arith.addf %27, %39 : vector<8x256xf32>
    %c0_13 = arith.constant 0 : index
    %c1 = arith.constant 1 : index
    %41 = vector.load %arg2[%c0_13, %c1] : memref<8x72xf32, #tpu.memory_space<vmem>>, vector<8x1xf32>
    %42 = vector.extract_strided_slice %34 {offsets = [1, 0], sizes = [1, 256], strides = [1, 1]} : vector<8x256xf32> to vector<1x256xf32>
    %43 = vector.broadcast %41 : vector<8x1xf32> to vector<8x256xf32>
    %44 = vector.broadcast %42 : vector<1x256xf32> to vector<8x256xf32>
    %45 = arith.mulf %43, %44 : vector<8x256xf32>
    %46 = arith.addf %28, %45 : vector<8x256xf32>
    %c0_14 = arith.constant 0 : index
    %c2 = arith.constant 2 : index
    %47 = vector.load %arg2[%c0_14, %c2] : memref<8x72xf32, #tpu.memory_space<vmem>>, vector<8x1xf32>
    %48 = vector.extract_strided_slice %34 {offsets = [2, 0], sizes = [1, 256], strides = [1, 1]} : vector<8x256xf32> to vector<1x256xf32>
    %49 = vector.broadcast %47 : vector<8x1xf32> to vector<8x256xf32>
    %50 = vector.broadcast %48 : vector<1x256xf32> to vector<8x256xf32>
    %51 = arith.mulf %49, %50 : vector<8x256xf32>
    %52 = arith.addf %29, %51 : vector<8x256xf32>
    %c0_15 = arith.constant 0 : index
    %c3 = arith.constant 3 : index
    %53 = vector.load %arg2[%c0_15, %c3] : memref<8x72xf32, #tpu.memory_space<vmem>>, vector<8x1xf32>
    %54 = vector.extract_strided_slice %34 {offsets = [3, 0], sizes = [1, 256], strides = [1, 1]} : vector<8x256xf32> to vector<1x256xf32>
    %55 = vector.broadcast %53 : vector<8x1xf32> to vector<8x256xf32>
    %56 = vector.broadcast %54 : vector<1x256xf32> to vector<8x256xf32>
    %57 = arith.mulf %55, %56 : vector<8x256xf32>
    %58 = arith.addf %30, %57 : vector<8x256xf32>
    %c0_16 = arith.constant 0 : index
    %c4 = arith.constant 4 : index
    %59 = vector.load %arg2[%c0_16, %c4] : memref<8x72xf32, #tpu.memory_space<vmem>>, vector<8x1xf32>
    %60 = vector.extract_strided_slice %34 {offsets = [4, 0], sizes = [1, 256], strides = [1, 1]} : vector<8x256xf32> to vector<1x256xf32>
    %61 = vector.broadcast %59 : vector<8x1xf32> to vector<8x256xf32>
    %62 = vector.broadcast %60 : vector<1x256xf32> to vector<8x256xf32>
    %63 = arith.mulf %61, %62 : vector<8x256xf32>
    %64 = arith.addf %40, %63 : vector<8x256xf32>
    %c0_17 = arith.constant 0 : index
    %c5 = arith.constant 5 : index
    %65 = vector.load %arg2[%c0_17, %c5] : memref<8x72xf32, #tpu.memory_space<vmem>>, vector<8x1xf32>
    %66 = vector.extract_strided_slice %34 {offsets = [5, 0], sizes = [1, 256], strides = [1, 1]} : vector<8x256xf32> to vector<1x256xf32>
    %67 = vector.broadcast %65 : vector<8x1xf32> to vector<8x256xf32>
    %68 = vector.broadcast %66 : vector<1x256xf32> to vector<8x256xf32>
    %69 = arith.mulf %67, %68 : vector<8x256xf32>
    %70 = arith.addf %46, %69 : vector<8x256xf32>
    %c0_18 = arith.constant 0 : index
    %c6 = arith.constant 6 : index
    %71 = vector.load %arg2[%c0_18, %c6] : memref<8x72xf32, #tpu.memory_space<vmem>>, vector<8x1xf32>
    %72 = vector.extract_strided_slice %34 {offsets = [6, 0], sizes = [1, 256], strides = [1, 1]} : vector<8x256xf32> to vector<1x256xf32>
    %73 = vector.broadcast %71 : vector<8x1xf32> to vector<8x256xf32>
    %74 = vector.broadcast %72 : vector<1x256xf32> to vector<8x256xf32>
    %75 = arith.mulf %73, %74 : vector<8x256xf32>
    %76 = arith.addf %52, %75 : vector<8x256xf32>
    %c0_19 = arith.constant 0 : index
    %c7 = arith.constant 7 : index
    %77 = vector.load %arg2[%c0_19, %c7] : memref<8x72xf32, #tpu.memory_space<vmem>>, vector<8x1xf32>
    %78 = vector.extract_strided_slice %34 {offsets = [7, 0], sizes = [1, 256], strides = [1, 1]} : vector<8x256xf32> to vector<1x256xf32>
    %79 = vector.broadcast %77 : vector<8x1xf32> to vector<8x256xf32>
    %80 = vector.broadcast %78 : vector<1x256xf32> to vector<8x256xf32>
    %81 = arith.mulf %79, %80 : vector<8x256xf32>
    %82 = arith.addf %58, %81 : vector<8x256xf32>
    %c16_i32_20 = arith.constant 16 : i32
    %83 = tpu.dynamic_rotate %1 by %c16_i32_20 dim 1 : vector<8x256xf32>, i32 -> vector<8x256xf32>
    %cst_21 = arith.constant 0.000000e+00 : f32
    %84 = vector.broadcast %cst_21 : f32 to vector<8x256xf32>
    %85 = arith.select %20, %83, %84 : vector<8x256xi1>, vector<8x256xf32>
    %c0_22 = arith.constant 0 : index
    %c8 = arith.constant 8 : index
    %86 = vector.load %arg2[%c0_22, %c8] : memref<8x72xf32, #tpu.memory_space<vmem>>, vector<8x1xf32>
    %87 = vector.extract_strided_slice %85 {offsets = [0, 0], sizes = [1, 256], strides = [1, 1]} : vector<8x256xf32> to vector<1x256xf32>
    %88 = vector.broadcast %86 : vector<8x1xf32> to vector<8x256xf32>
    %89 = vector.broadcast %87 : vector<1x256xf32> to vector<8x256xf32>
    %90 = arith.mulf %88, %89 : vector<8x256xf32>
    %91 = arith.addf %64, %90 : vector<8x256xf32>
    %c0_23 = arith.constant 0 : index
    %c9 = arith.constant 9 : index
    %92 = vector.load %arg2[%c0_23, %c9] : memref<8x72xf32, #tpu.memory_space<vmem>>, vector<8x1xf32>
    %93 = vector.extract_strided_slice %85 {offsets = [1, 0], sizes = [1, 256], strides = [1, 1]} : vector<8x256xf32> to vector<1x256xf32>
    %94 = vector.broadcast %92 : vector<8x1xf32> to vector<8x256xf32>
    %95 = vector.broadcast %93 : vector<1x256xf32> to vector<8x256xf32>
    %96 = arith.mulf %94, %95 : vector<8x256xf32>
    %97 = arith.addf %70, %96 : vector<8x256xf32>
    %c0_24 = arith.constant 0 : index
    %c10 = arith.constant 10 : index
    %98 = vector.load %arg2[%c0_24, %c10] : memref<8x72xf32, #tpu.memory_space<vmem>>, vector<8x1xf32>
    %99 = vector.extract_strided_slice %85 {offsets = [2, 0], sizes = [1, 256], strides = [1, 1]} : vector<8x256xf32> to vector<1x256xf32>
    %100 = vector.broadcast %98 : vector<8x1xf32> to vector<8x256xf32>
    %101 = vector.broadcast %99 : vector<1x256xf32> to vector<8x256xf32>
    %102 = arith.mulf %100, %101 : vector<8x256xf32>
    %103 = arith.addf %76, %102 : vector<8x256xf32>
    %c0_25 = arith.constant 0 : index
    %c11 = arith.constant 11 : index
    %104 = vector.load %arg2[%c0_25, %c11] : memref<8x72xf32, #tpu.memory_space<vmem>>, vector<8x1xf32>
    %105 = vector.extract_strided_slice %85 {offsets = [3, 0], sizes = [1, 256], strides = [1, 1]} : vector<8x256xf32> to vector<1x256xf32>
    %106 = vector.broadcast %104 : vector<8x1xf32> to vector<8x256xf32>
    %107 = vector.broadcast %105 : vector<1x256xf32> to vector<8x256xf32>
    %108 = arith.mulf %106, %107 : vector<8x256xf32>
    %109 = arith.addf %82, %108 : vector<8x256xf32>
    %c0_26 = arith.constant 0 : index
    %c12 = arith.constant 12 : index
    %110 = vector.load %arg2[%c0_26, %c12] : memref<8x72xf32, #tpu.memory_space<vmem>>, vector<8x1xf32>
    %111 = vector.extract_strided_slice %85 {offsets = [4, 0], sizes = [1, 256], strides = [1, 1]} : vector<8x256xf32> to vector<1x256xf32>
    %112 = vector.broadcast %110 : vector<8x1xf32> to vector<8x256xf32>
    %113 = vector.broadcast %111 : vector<1x256xf32> to vector<8x256xf32>
    %114 = arith.mulf %112, %113 : vector<8x256xf32>
    %115 = arith.addf %91, %114 : vector<8x256xf32>
    %c0_27 = arith.constant 0 : index
    %c13 = arith.constant 13 : index
    %116 = vector.load %arg2[%c0_27, %c13] : memref<8x72xf32, #tpu.memory_space<vmem>>, vector<8x1xf32>
    %117 = vector.extract_strided_slice %85 {offsets = [5, 0], sizes = [1, 256], strides = [1, 1]} : vector<8x256xf32> to vector<1x256xf32>
    %118 = vector.broadcast %116 : vector<8x1xf32> to vector<8x256xf32>
    %119 = vector.broadcast %117 : vector<1x256xf32> to vector<8x256xf32>
    %120 = arith.mulf %118, %119 : vector<8x256xf32>
    %121 = arith.addf %97, %120 : vector<8x256xf32>
    %c0_28 = arith.constant 0 : index
    %c14 = arith.constant 14 : index
    %122 = vector.load %arg2[%c0_28, %c14] : memref<8x72xf32, #tpu.memory_space<vmem>>, vector<8x1xf32>
    %123 = vector.extract_strided_slice %85 {offsets = [6, 0], sizes = [1, 256], strides = [1, 1]} : vector<8x256xf32> to vector<1x256xf32>
    %124 = vector.broadcast %122 : vector<8x1xf32> to vector<8x256xf32>
    %125 = vector.broadcast %123 : vector<1x256xf32> to vector<8x256xf32>
    %126 = arith.mulf %124, %125 : vector<8x256xf32>
    %127 = arith.addf %103, %126 : vector<8x256xf32>
    %c0_29 = arith.constant 0 : index
    %c15 = arith.constant 15 : index
    %128 = vector.load %arg2[%c0_29, %c15] : memref<8x72xf32, #tpu.memory_space<vmem>>, vector<8x1xf32>
    %129 = vector.extract_strided_slice %85 {offsets = [7, 0], sizes = [1, 256], strides = [1, 1]} : vector<8x256xf32> to vector<1x256xf32>
    %130 = vector.broadcast %128 : vector<8x1xf32> to vector<8x256xf32>
    %131 = vector.broadcast %129 : vector<1x256xf32> to vector<8x256xf32>
    %132 = arith.mulf %130, %131 : vector<8x256xf32>
    %133 = arith.addf %109, %132 : vector<8x256xf32>
    %c15_i32 = arith.constant 15 : i32
    %134 = tpu.dynamic_rotate %1 by %c15_i32 dim 1 : vector<8x256xf32>, i32 -> vector<8x256xf32>
    %135 = arith.andi %20, %26 : vector<8x256xi1>
    %cst_30 = arith.constant 0.000000e+00 : f32
    %136 = vector.broadcast %cst_30 : f32 to vector<8x256xf32>
    %137 = arith.select %135, %134, %136 : vector<8x256xi1>, vector<8x256xf32>
    %c0_31 = arith.constant 0 : index
    %c16 = arith.constant 16 : index
    %138 = vector.load %arg2[%c0_31, %c16] : memref<8x72xf32, #tpu.memory_space<vmem>>, vector<8x1xf32>
    %139 = vector.extract_strided_slice %137 {offsets = [0, 0], sizes = [1, 256], strides = [1, 1]} : vector<8x256xf32> to vector<1x256xf32>
    %140 = vector.broadcast %138 : vector<8x1xf32> to vector<8x256xf32>
    %141 = vector.broadcast %139 : vector<1x256xf32> to vector<8x256xf32>
    %142 = arith.mulf %140, %141 : vector<8x256xf32>
    %143 = arith.addf %115, %142 : vector<8x256xf32>
    %c0_32 = arith.constant 0 : index
    %c17 = arith.constant 17 : index
    %144 = vector.load %arg2[%c0_32, %c17] : memref<8x72xf32, #tpu.memory_space<vmem>>, vector<8x1xf32>
    %145 = vector.extract_strided_slice %137 {offsets = [1, 0], sizes = [1, 256], strides = [1, 1]} : vector<8x256xf32> to vector<1x256xf32>
    %146 = vector.broadcast %144 : vector<8x1xf32> to vector<8x256xf32>
    %147 = vector.broadcast %145 : vector<1x256xf32> to vector<8x256xf32>
    %148 = arith.mulf %146, %147 : vector<8x256xf32>
    %149 = arith.addf %121, %148 : vector<8x256xf32>
    %c0_33 = arith.constant 0 : index
    %c18 = arith.constant 18 : index
    %150 = vector.load %arg2[%c0_33, %c18] : memref<8x72xf32, #tpu.memory_space<vmem>>, vector<8x1xf32>
    %151 = vector.extract_strided_slice %137 {offsets = [2, 0], sizes = [1, 256], strides = [1, 1]} : vector<8x256xf32> to vector<1x256xf32>
    %152 = vector.broadcast %150 : vector<8x1xf32> to vector<8x256xf32>
    %153 = vector.broadcast %151 : vector<1x256xf32> to vector<8x256xf32>
    %154 = arith.mulf %152, %153 : vector<8x256xf32>
    %155 = arith.addf %127, %154 : vector<8x256xf32>
    %c0_34 = arith.constant 0 : index
    %c19 = arith.constant 19 : index
    %156 = vector.load %arg2[%c0_34, %c19] : memref<8x72xf32, #tpu.memory_space<vmem>>, vector<8x1xf32>
    %157 = vector.extract_strided_slice %137 {offsets = [3, 0], sizes = [1, 256], strides = [1, 1]} : vector<8x256xf32> to vector<1x256xf32>
    %158 = vector.broadcast %156 : vector<8x1xf32> to vector<8x256xf32>
    %159 = vector.broadcast %157 : vector<1x256xf32> to vector<8x256xf32>
    %160 = arith.mulf %158, %159 : vector<8x256xf32>
    %161 = arith.addf %133, %160 : vector<8x256xf32>
    %c0_35 = arith.constant 0 : index
    %c20 = arith.constant 20 : index
    %162 = vector.load %arg2[%c0_35, %c20] : memref<8x72xf32, #tpu.memory_space<vmem>>, vector<8x1xf32>
    %163 = vector.extract_strided_slice %137 {offsets = [4, 0], sizes = [1, 256], strides = [1, 1]} : vector<8x256xf32> to vector<1x256xf32>
    %164 = vector.broadcast %162 : vector<8x1xf32> to vector<8x256xf32>
    %165 = vector.broadcast %163 : vector<1x256xf32> to vector<8x256xf32>
    %166 = arith.mulf %164, %165 : vector<8x256xf32>
    %167 = arith.addf %143, %166 : vector<8x256xf32>
    %c0_36 = arith.constant 0 : index
    %c21 = arith.constant 21 : index
    %168 = vector.load %arg2[%c0_36, %c21] : memref<8x72xf32, #tpu.memory_space<vmem>>, vector<8x1xf32>
    %169 = vector.extract_strided_slice %137 {offsets = [5, 0], sizes = [1, 256], strides = [1, 1]} : vector<8x256xf32> to vector<1x256xf32>
    %170 = vector.broadcast %168 : vector<8x1xf32> to vector<8x256xf32>
    %171 = vector.broadcast %169 : vector<1x256xf32> to vector<8x256xf32>
    %172 = arith.mulf %170, %171 : vector<8x256xf32>
    %173 = arith.addf %149, %172 : vector<8x256xf32>
    %c0_37 = arith.constant 0 : index
    %c22 = arith.constant 22 : index
    %174 = vector.load %arg2[%c0_37, %c22] : memref<8x72xf32, #tpu.memory_space<vmem>>, vector<8x1xf32>
    %175 = vector.extract_strided_slice %137 {offsets = [6, 0], sizes = [1, 256], strides = [1, 1]} : vector<8x256xf32> to vector<1x256xf32>
    %176 = vector.broadcast %174 : vector<8x1xf32> to vector<8x256xf32>
    %177 = vector.broadcast %175 : vector<1x256xf32> to vector<8x256xf32>
    %178 = arith.mulf %176, %177 : vector<8x256xf32>
    %179 = arith.addf %155, %178 : vector<8x256xf32>
    %c0_38 = arith.constant 0 : index
    %c23 = arith.constant 23 : index
    %180 = vector.load %arg2[%c0_38, %c23] : memref<8x72xf32, #tpu.memory_space<vmem>>, vector<8x1xf32>
    %181 = vector.extract_strided_slice %137 {offsets = [7, 0], sizes = [1, 256], strides = [1, 1]} : vector<8x256xf32> to vector<1x256xf32>
    %182 = vector.broadcast %180 : vector<8x1xf32> to vector<8x256xf32>
    %183 = vector.broadcast %181 : vector<1x256xf32> to vector<8x256xf32>
    %184 = arith.mulf %182, %183 : vector<8x256xf32>
    %185 = arith.addf %161, %184 : vector<8x256xf32>
    %c1_i32_39 = arith.constant 1 : i32
    %186 = tpu.dynamic_rotate %1 by %c1_i32_39 dim 1 : vector<8x256xf32>, i32 -> vector<8x256xf32>
    %cst_40 = arith.constant 0.000000e+00 : f32
    %187 = vector.broadcast %cst_40 : f32 to vector<8x256xf32>
    %188 = arith.select %24, %186, %187 : vector<8x256xi1>, vector<8x256xf32>
    %c0_41 = arith.constant 0 : index
    %c24 = arith.constant 24 : index
    %189 = vector.load %arg2[%c0_41, %c24] : memref<8x72xf32, #tpu.memory_space<vmem>>, vector<8x1xf32>
    %190 = vector.extract_strided_slice %188 {offsets = [0, 0], sizes = [1, 256], strides = [1, 1]} : vector<8x256xf32> to vector<1x256xf32>
    %191 = vector.broadcast %189 : vector<8x1xf32> to vector<8x256xf32>
    %192 = vector.broadcast %190 : vector<1x256xf32> to vector<8x256xf32>
    %193 = arith.mulf %191, %192 : vector<8x256xf32>
    %194 = arith.addf %167, %193 : vector<8x256xf32>
    %c0_42 = arith.constant 0 : index
    %c25 = arith.constant 25 : index
    %195 = vector.load %arg2[%c0_42, %c25] : memref<8x72xf32, #tpu.memory_space<vmem>>, vector<8x1xf32>
    %196 = vector.extract_strided_slice %188 {offsets = [1, 0], sizes = [1, 256], strides = [1, 1]} : vector<8x256xf32> to vector<1x256xf32>
    %197 = vector.broadcast %195 : vector<8x1xf32> to vector<8x256xf32>
    %198 = vector.broadcast %196 : vector<1x256xf32> to vector<8x256xf32>
    %199 = arith.mulf %197, %198 : vector<8x256xf32>
    %200 = arith.addf %173, %199 : vector<8x256xf32>
    %c0_43 = arith.constant 0 : index
    %c26 = arith.constant 26 : index
    %201 = vector.load %arg2[%c0_43, %c26] : memref<8x72xf32, #tpu.memory_space<vmem>>, vector<8x1xf32>
    %202 = vector.extract_strided_slice %188 {offsets = [2, 0], sizes = [1, 256], strides = [1, 1]} : vector<8x256xf32> to vector<1x256xf32>
    %203 = vector.broadcast %201 : vector<8x1xf32> to vector<8x256xf32>
    %204 = vector.broadcast %202 : vector<1x256xf32> to vector<8x256xf32>
    %205 = arith.mulf %203, %204 : vector<8x256xf32>
    %206 = arith.addf %179, %205 : vector<8x256xf32>
    %c0_44 = arith.constant 0 : index
    %c27 = arith.constant 27 : index
    %207 = vector.load %arg2[%c0_44, %c27] : memref<8x72xf32, #tpu.memory_space<vmem>>, vector<8x1xf32>
    %208 = vector.extract_strided_slice %188 {offsets = [3, 0], sizes = [1, 256], strides = [1, 1]} : vector<8x256xf32> to vector<1x256xf32>
    %209 = vector.broadcast %207 : vector<8x1xf32> to vector<8x256xf32>
    %210 = vector.broadcast %208 : vector<1x256xf32> to vector<8x256xf32>
    %211 = arith.mulf %209, %210 : vector<8x256xf32>
    %212 = arith.addf %185, %211 : vector<8x256xf32>
    %c0_45 = arith.constant 0 : index
    %c28 = arith.constant 28 : index
    %213 = vector.load %arg2[%c0_45, %c28] : memref<8x72xf32, #tpu.memory_space<vmem>>, vector<8x1xf32>
    %214 = vector.extract_strided_slice %188 {offsets = [4, 0], sizes = [1, 256], strides = [1, 1]} : vector<8x256xf32> to vector<1x256xf32>
    %215 = vector.broadcast %213 : vector<8x1xf32> to vector<8x256xf32>
    %216 = vector.broadcast %214 : vector<1x256xf32> to vector<8x256xf32>
    %217 = arith.mulf %215, %216 : vector<8x256xf32>
    %218 = arith.addf %194, %217 : vector<8x256xf32>
    %c0_46 = arith.constant 0 : index
    %c29 = arith.constant 29 : index
    %219 = vector.load %arg2[%c0_46, %c29] : memref<8x72xf32, #tpu.memory_space<vmem>>, vector<8x1xf32>
    %220 = vector.extract_strided_slice %188 {offsets = [5, 0], sizes = [1, 256], strides = [1, 1]} : vector<8x256xf32> to vector<1x256xf32>
    %221 = vector.broadcast %219 : vector<8x1xf32> to vector<8x256xf32>
    %222 = vector.broadcast %220 : vector<1x256xf32> to vector<8x256xf32>
    %223 = arith.mulf %221, %222 : vector<8x256xf32>
    %224 = arith.addf %200, %223 : vector<8x256xf32>
    %c0_47 = arith.constant 0 : index
    %c30 = arith.constant 30 : index
    %225 = vector.load %arg2[%c0_47, %c30] : memref<8x72xf32, #tpu.memory_space<vmem>>, vector<8x1xf32>
    %226 = vector.extract_strided_slice %188 {offsets = [6, 0], sizes = [1, 256], strides = [1, 1]} : vector<8x256xf32> to vector<1x256xf32>
    %227 = vector.broadcast %225 : vector<8x1xf32> to vector<8x256xf32>
    %228 = vector.broadcast %226 : vector<1x256xf32> to vector<8x256xf32>
    %229 = arith.mulf %227, %228 : vector<8x256xf32>
    %230 = arith.addf %206, %229 : vector<8x256xf32>
    %c0_48 = arith.constant 0 : index
    %c31 = arith.constant 31 : index
    %231 = vector.load %arg2[%c0_48, %c31] : memref<8x72xf32, #tpu.memory_space<vmem>>, vector<8x1xf32>
    %232 = vector.extract_strided_slice %188 {offsets = [7, 0], sizes = [1, 256], strides = [1, 1]} : vector<8x256xf32> to vector<1x256xf32>
    %233 = vector.broadcast %231 : vector<8x1xf32> to vector<8x256xf32>
    %234 = vector.broadcast %232 : vector<1x256xf32> to vector<8x256xf32>
    %235 = arith.mulf %233, %234 : vector<8x256xf32>
    %236 = arith.addf %212, %235 : vector<8x256xf32>
    %c0_49 = arith.constant 0 : index
    %c32 = arith.constant 32 : index
    %237 = vector.load %arg2[%c0_49, %c32] : memref<8x72xf32, #tpu.memory_space<vmem>>, vector<8x1xf32>
    %238 = vector.extract_strided_slice %1 {offsets = [0, 0], sizes = [1, 256], strides = [1, 1]} : vector<8x256xf32> to vector<1x256xf32>
    %239 = vector.broadcast %237 : vector<8x1xf32> to vector<8x256xf32>
    %240 = vector.broadcast %238 : vector<1x256xf32> to vector<8x256xf32>
    %241 = arith.mulf %239, %240 : vector<8x256xf32>
    %242 = arith.addf %218, %241 : vector<8x256xf32>
    %c0_50 = arith.constant 0 : index
    %c33 = arith.constant 33 : index
    %243 = vector.load %arg2[%c0_50, %c33] : memref<8x72xf32, #tpu.memory_space<vmem>>, vector<8x1xf32>
    %244 = vector.extract_strided_slice %1 {offsets = [1, 0], sizes = [1, 256], strides = [1, 1]} : vector<8x256xf32> to vector<1x256xf32>
    %245 = vector.broadcast %243 : vector<8x1xf32> to vector<8x256xf32>
    %246 = vector.broadcast %244 : vector<1x256xf32> to vector<8x256xf32>
    %247 = arith.mulf %245, %246 : vector<8x256xf32>
    %248 = arith.addf %224, %247 : vector<8x256xf32>
    %c0_51 = arith.constant 0 : index
    %c34 = arith.constant 34 : index
    %249 = vector.load %arg2[%c0_51, %c34] : memref<8x72xf32, #tpu.memory_space<vmem>>, vector<8x1xf32>
    %250 = vector.extract_strided_slice %1 {offsets = [2, 0], sizes = [1, 256], strides = [1, 1]} : vector<8x256xf32> to vector<1x256xf32>
    %251 = vector.broadcast %249 : vector<8x1xf32> to vector<8x256xf32>
    %252 = vector.broadcast %250 : vector<1x256xf32> to vector<8x256xf32>
    %253 = arith.mulf %251, %252 : vector<8x256xf32>
    %254 = arith.addf %230, %253 : vector<8x256xf32>
    %c0_52 = arith.constant 0 : index
    %c35 = arith.constant 35 : index
    %255 = vector.load %arg2[%c0_52, %c35] : memref<8x72xf32, #tpu.memory_space<vmem>>, vector<8x1xf32>
    %256 = vector.extract_strided_slice %1 {offsets = [3, 0], sizes = [1, 256], strides = [1, 1]} : vector<8x256xf32> to vector<1x256xf32>
    %257 = vector.broadcast %255 : vector<8x1xf32> to vector<8x256xf32>
    %258 = vector.broadcast %256 : vector<1x256xf32> to vector<8x256xf32>
    %259 = arith.mulf %257, %258 : vector<8x256xf32>
    %260 = arith.addf %236, %259 : vector<8x256xf32>
    %c0_53 = arith.constant 0 : index
    %c36 = arith.constant 36 : index
    %261 = vector.load %arg2[%c0_53, %c36] : memref<8x72xf32, #tpu.memory_space<vmem>>, vector<8x1xf32>
    %262 = vector.extract_strided_slice %1 {offsets = [4, 0], sizes = [1, 256], strides = [1, 1]} : vector<8x256xf32> to vector<1x256xf32>
    %263 = vector.broadcast %261 : vector<8x1xf32> to vector<8x256xf32>
    %264 = vector.broadcast %262 : vector<1x256xf32> to vector<8x256xf32>
    %265 = arith.mulf %263, %264 : vector<8x256xf32>
    %266 = arith.addf %242, %265 : vector<8x256xf32>
    %c0_54 = arith.constant 0 : index
    %c37 = arith.constant 37 : index
    %267 = vector.load %arg2[%c0_54, %c37] : memref<8x72xf32, #tpu.memory_space<vmem>>, vector<8x1xf32>
    %268 = vector.extract_strided_slice %1 {offsets = [5, 0], sizes = [1, 256], strides = [1, 1]} : vector<8x256xf32> to vector<1x256xf32>
    %269 = vector.broadcast %267 : vector<8x1xf32> to vector<8x256xf32>
    %270 = vector.broadcast %268 : vector<1x256xf32> to vector<8x256xf32>
    %271 = arith.mulf %269, %270 : vector<8x256xf32>
    %272 = arith.addf %248, %271 : vector<8x256xf32>
    %c0_55 = arith.constant 0 : index
    %c38 = arith.constant 38 : index
    %273 = vector.load %arg2[%c0_55, %c38] : memref<8x72xf32, #tpu.memory_space<vmem>>, vector<8x1xf32>
    %274 = vector.extract_strided_slice %1 {offsets = [6, 0], sizes = [1, 256], strides = [1, 1]} : vector<8x256xf32> to vector<1x256xf32>
    %275 = vector.broadcast %273 : vector<8x1xf32> to vector<8x256xf32>
    %276 = vector.broadcast %274 : vector<1x256xf32> to vector<8x256xf32>
    %277 = arith.mulf %275, %276 : vector<8x256xf32>
    %278 = arith.addf %254, %277 : vector<8x256xf32>
    %c0_56 = arith.constant 0 : index
    %c39 = arith.constant 39 : index
    %279 = vector.load %arg2[%c0_56, %c39] : memref<8x72xf32, #tpu.memory_space<vmem>>, vector<8x1xf32>
    %280 = vector.extract_strided_slice %1 {offsets = [7, 0], sizes = [1, 256], strides = [1, 1]} : vector<8x256xf32> to vector<1x256xf32>
    %281 = vector.broadcast %279 : vector<8x1xf32> to vector<8x256xf32>
    %282 = vector.broadcast %280 : vector<1x256xf32> to vector<8x256xf32>
    %283 = arith.mulf %281, %282 : vector<8x256xf32>
    %284 = arith.addf %260, %283 : vector<8x256xf32>
    %c255_i32 = arith.constant 255 : i32
    %285 = tpu.dynamic_rotate %1 by %c255_i32 dim 1 : vector<8x256xf32>, i32 -> vector<8x256xf32>
    %cst_57 = arith.constant 0.000000e+00 : f32
    %286 = vector.broadcast %cst_57 : f32 to vector<8x256xf32>
    %287 = arith.select %26, %285, %286 : vector<8x256xi1>, vector<8x256xf32>
    %c0_58 = arith.constant 0 : index
    %c40 = arith.constant 40 : index
    %288 = vector.load %arg2[%c0_58, %c40] : memref<8x72xf32, #tpu.memory_space<vmem>>, vector<8x1xf32>
    %289 = vector.extract_strided_slice %287 {offsets = [0, 0], sizes = [1, 256], strides = [1, 1]} : vector<8x256xf32> to vector<1x256xf32>
    %290 = vector.broadcast %288 : vector<8x1xf32> to vector<8x256xf32>
    %291 = vector.broadcast %289 : vector<1x256xf32> to vector<8x256xf32>
    %292 = arith.mulf %290, %291 : vector<8x256xf32>
    %293 = arith.addf %266, %292 : vector<8x256xf32>
    %c0_59 = arith.constant 0 : index
    %c41 = arith.constant 41 : index
    %294 = vector.load %arg2[%c0_59, %c41] : memref<8x72xf32, #tpu.memory_space<vmem>>, vector<8x1xf32>
    %295 = vector.extract_strided_slice %287 {offsets = [1, 0], sizes = [1, 256], strides = [1, 1]} : vector<8x256xf32> to vector<1x256xf32>
    %296 = vector.broadcast %294 : vector<8x1xf32> to vector<8x256xf32>
    %297 = vector.broadcast %295 : vector<1x256xf32> to vector<8x256xf32>
    %298 = arith.mulf %296, %297 : vector<8x256xf32>
    %299 = arith.addf %272, %298 : vector<8x256xf32>
    %c0_60 = arith.constant 0 : index
    %c42 = arith.constant 42 : index
    %300 = vector.load %arg2[%c0_60, %c42] : memref<8x72xf32, #tpu.memory_space<vmem>>, vector<8x1xf32>
    %301 = vector.extract_strided_slice %287 {offsets = [2, 0], sizes = [1, 256], strides = [1, 1]} : vector<8x256xf32> to vector<1x256xf32>
    %302 = vector.broadcast %300 : vector<8x1xf32> to vector<8x256xf32>
    %303 = vector.broadcast %301 : vector<1x256xf32> to vector<8x256xf32>
    %304 = arith.mulf %302, %303 : vector<8x256xf32>
    %305 = arith.addf %278, %304 : vector<8x256xf32>
    %c0_61 = arith.constant 0 : index
    %c43 = arith.constant 43 : index
    %306 = vector.load %arg2[%c0_61, %c43] : memref<8x72xf32, #tpu.memory_space<vmem>>, vector<8x1xf32>
    %307 = vector.extract_strided_slice %287 {offsets = [3, 0], sizes = [1, 256], strides = [1, 1]} : vector<8x256xf32> to vector<1x256xf32>
    %308 = vector.broadcast %306 : vector<8x1xf32> to vector<8x256xf32>
    %309 = vector.broadcast %307 : vector<1x256xf32> to vector<8x256xf32>
    %310 = arith.mulf %308, %309 : vector<8x256xf32>
    %311 = arith.addf %284, %310 : vector<8x256xf32>
    %c0_62 = arith.constant 0 : index
    %c44 = arith.constant 44 : index
    %312 = vector.load %arg2[%c0_62, %c44] : memref<8x72xf32, #tpu.memory_space<vmem>>, vector<8x1xf32>
    %313 = vector.extract_strided_slice %287 {offsets = [4, 0], sizes = [1, 256], strides = [1, 1]} : vector<8x256xf32> to vector<1x256xf32>
    %314 = vector.broadcast %312 : vector<8x1xf32> to vector<8x256xf32>
    %315 = vector.broadcast %313 : vector<1x256xf32> to vector<8x256xf32>
    %316 = arith.mulf %314, %315 : vector<8x256xf32>
    %317 = arith.addf %293, %316 : vector<8x256xf32>
    %c0_63 = arith.constant 0 : index
    %c45 = arith.constant 45 : index
    %318 = vector.load %arg2[%c0_63, %c45] : memref<8x72xf32, #tpu.memory_space<vmem>>, vector<8x1xf32>
    %319 = vector.extract_strided_slice %287 {offsets = [5, 0], sizes = [1, 256], strides = [1, 1]} : vector<8x256xf32> to vector<1x256xf32>
    %320 = vector.broadcast %318 : vector<8x1xf32> to vector<8x256xf32>
    %321 = vector.broadcast %319 : vector<1x256xf32> to vector<8x256xf32>
    %322 = arith.mulf %320, %321 : vector<8x256xf32>
    %323 = arith.addf %299, %322 : vector<8x256xf32>
    %c0_64 = arith.constant 0 : index
    %c46 = arith.constant 46 : index
    %324 = vector.load %arg2[%c0_64, %c46] : memref<8x72xf32, #tpu.memory_space<vmem>>, vector<8x1xf32>
    %325 = vector.extract_strided_slice %287 {offsets = [6, 0], sizes = [1, 256], strides = [1, 1]} : vector<8x256xf32> to vector<1x256xf32>
    %326 = vector.broadcast %324 : vector<8x1xf32> to vector<8x256xf32>
    %327 = vector.broadcast %325 : vector<1x256xf32> to vector<8x256xf32>
    %328 = arith.mulf %326, %327 : vector<8x256xf32>
    %329 = arith.addf %305, %328 : vector<8x256xf32>
    %c0_65 = arith.constant 0 : index
    %c47 = arith.constant 47 : index
    %330 = vector.load %arg2[%c0_65, %c47] : memref<8x72xf32, #tpu.memory_space<vmem>>, vector<8x1xf32>
    %331 = vector.extract_strided_slice %287 {offsets = [7, 0], sizes = [1, 256], strides = [1, 1]} : vector<8x256xf32> to vector<1x256xf32>
    %332 = vector.broadcast %330 : vector<8x1xf32> to vector<8x256xf32>
    %333 = vector.broadcast %331 : vector<1x256xf32> to vector<8x256xf32>
    %334 = arith.mulf %332, %333 : vector<8x256xf32>
    %335 = arith.addf %311, %334 : vector<8x256xf32>
    %c241_i32 = arith.constant 241 : i32
    %336 = tpu.dynamic_rotate %1 by %c241_i32 dim 1 : vector<8x256xf32>, i32 -> vector<8x256xf32>
    %337 = arith.andi %22, %24 : vector<8x256xi1>
    %cst_66 = arith.constant 0.000000e+00 : f32
    %338 = vector.broadcast %cst_66 : f32 to vector<8x256xf32>
    %339 = arith.select %337, %336, %338 : vector<8x256xi1>, vector<8x256xf32>
    %c0_67 = arith.constant 0 : index
    %c48 = arith.constant 48 : index
    %340 = vector.load %arg2[%c0_67, %c48] : memref<8x72xf32, #tpu.memory_space<vmem>>, vector<8x1xf32>
    %341 = vector.extract_strided_slice %339 {offsets = [0, 0], sizes = [1, 256], strides = [1, 1]} : vector<8x256xf32> to vector<1x256xf32>
    %342 = vector.broadcast %340 : vector<8x1xf32> to vector<8x256xf32>
    %343 = vector.broadcast %341 : vector<1x256xf32> to vector<8x256xf32>
    %344 = arith.mulf %342, %343 : vector<8x256xf32>
    %345 = arith.addf %317, %344 : vector<8x256xf32>
    %c0_68 = arith.constant 0 : index
    %c49 = arith.constant 49 : index
    %346 = vector.load %arg2[%c0_68, %c49] : memref<8x72xf32, #tpu.memory_space<vmem>>, vector<8x1xf32>
    %347 = vector.extract_strided_slice %339 {offsets = [1, 0], sizes = [1, 256], strides = [1, 1]} : vector<8x256xf32> to vector<1x256xf32>
    %348 = vector.broadcast %346 : vector<8x1xf32> to vector<8x256xf32>
    %349 = vector.broadcast %347 : vector<1x256xf32> to vector<8x256xf32>
    %350 = arith.mulf %348, %349 : vector<8x256xf32>
    %351 = arith.addf %323, %350 : vector<8x256xf32>
    %c0_69 = arith.constant 0 : index
    %c50 = arith.constant 50 : index
    %352 = vector.load %arg2[%c0_69, %c50] : memref<8x72xf32, #tpu.memory_space<vmem>>, vector<8x1xf32>
    %353 = vector.extract_strided_slice %339 {offsets = [2, 0], sizes = [1, 256], strides = [1, 1]} : vector<8x256xf32> to vector<1x256xf32>
    %354 = vector.broadcast %352 : vector<8x1xf32> to vector<8x256xf32>
    %355 = vector.broadcast %353 : vector<1x256xf32> to vector<8x256xf32>
    %356 = arith.mulf %354, %355 : vector<8x256xf32>
    %357 = arith.addf %329, %356 : vector<8x256xf32>
    %c0_70 = arith.constant 0 : index
    %c51 = arith.constant 51 : index
    %358 = vector.load %arg2[%c0_70, %c51] : memref<8x72xf32, #tpu.memory_space<vmem>>, vector<8x1xf32>
    %359 = vector.extract_strided_slice %339 {offsets = [3, 0], sizes = [1, 256], strides = [1, 1]} : vector<8x256xf32> to vector<1x256xf32>
    %360 = vector.broadcast %358 : vector<8x1xf32> to vector<8x256xf32>
    %361 = vector.broadcast %359 : vector<1x256xf32> to vector<8x256xf32>
    %362 = arith.mulf %360, %361 : vector<8x256xf32>
    %363 = arith.addf %335, %362 : vector<8x256xf32>
    %c0_71 = arith.constant 0 : index
    %c52 = arith.constant 52 : index
    %364 = vector.load %arg2[%c0_71, %c52] : memref<8x72xf32, #tpu.memory_space<vmem>>, vector<8x1xf32>
    %365 = vector.extract_strided_slice %339 {offsets = [4, 0], sizes = [1, 256], strides = [1, 1]} : vector<8x256xf32> to vector<1x256xf32>
    %366 = vector.broadcast %364 : vector<8x1xf32> to vector<8x256xf32>
    %367 = vector.broadcast %365 : vector<1x256xf32> to vector<8x256xf32>
    %368 = arith.mulf %366, %367 : vector<8x256xf32>
    %369 = arith.addf %345, %368 : vector<8x256xf32>
    %c0_72 = arith.constant 0 : index
    %c53 = arith.constant 53 : index
    %370 = vector.load %arg2[%c0_72, %c53] : memref<8x72xf32, #tpu.memory_space<vmem>>, vector<8x1xf32>
    %371 = vector.extract_strided_slice %339 {offsets = [5, 0], sizes = [1, 256], strides = [1, 1]} : vector<8x256xf32> to vector<1x256xf32>
    %372 = vector.broadcast %370 : vector<8x1xf32> to vector<8x256xf32>
    %373 = vector.broadcast %371 : vector<1x256xf32> to vector<8x256xf32>
    %374 = arith.mulf %372, %373 : vector<8x256xf32>
    %375 = arith.addf %351, %374 : vector<8x256xf32>
    %c0_73 = arith.constant 0 : index
    %c54 = arith.constant 54 : index
    %376 = vector.load %arg2[%c0_73, %c54] : memref<8x72xf32, #tpu.memory_space<vmem>>, vector<8x1xf32>
    %377 = vector.extract_strided_slice %339 {offsets = [6, 0], sizes = [1, 256], strides = [1, 1]} : vector<8x256xf32> to vector<1x256xf32>
    %378 = vector.broadcast %376 : vector<8x1xf32> to vector<8x256xf32>
    %379 = vector.broadcast %377 : vector<1x256xf32> to vector<8x256xf32>
    %380 = arith.mulf %378, %379 : vector<8x256xf32>
    %381 = arith.addf %357, %380 : vector<8x256xf32>
    %c0_74 = arith.constant 0 : index
    %c55 = arith.constant 55 : index
    %382 = vector.load %arg2[%c0_74, %c55] : memref<8x72xf32, #tpu.memory_space<vmem>>, vector<8x1xf32>
    %383 = vector.extract_strided_slice %339 {offsets = [7, 0], sizes = [1, 256], strides = [1, 1]} : vector<8x256xf32> to vector<1x256xf32>
    %384 = vector.broadcast %382 : vector<8x1xf32> to vector<8x256xf32>
    %385 = vector.broadcast %383 : vector<1x256xf32> to vector<8x256xf32>
    %386 = arith.mulf %384, %385 : vector<8x256xf32>
    %387 = arith.addf %363, %386 : vector<8x256xf32>
    %c240_i32_75 = arith.constant 240 : i32
    %388 = tpu.dynamic_rotate %1 by %c240_i32_75 dim 1 : vector<8x256xf32>, i32 -> vector<8x256xf32>
    %cst_76 = arith.constant 0.000000e+00 : f32
    %389 = vector.broadcast %cst_76 : f32 to vector<8x256xf32>
    %390 = arith.select %22, %388, %389 : vector<8x256xi1>, vector<8x256xf32>
    %c0_77 = arith.constant 0 : index
    %c56 = arith.constant 56 : index
    %391 = vector.load %arg2[%c0_77, %c56] : memref<8x72xf32, #tpu.memory_space<vmem>>, vector<8x1xf32>
    %392 = vector.extract_strided_slice %390 {offsets = [0, 0], sizes = [1, 256], strides = [1, 1]} : vector<8x256xf32> to vector<1x256xf32>
    %393 = vector.broadcast %391 : vector<8x1xf32> to vector<8x256xf32>
    %394 = vector.broadcast %392 : vector<1x256xf32> to vector<8x256xf32>
    %395 = arith.mulf %393, %394 : vector<8x256xf32>
    %396 = arith.addf %369, %395 : vector<8x256xf32>
    %c0_78 = arith.constant 0 : index
    %c57 = arith.constant 57 : index
    %397 = vector.load %arg2[%c0_78, %c57] : memref<8x72xf32, #tpu.memory_space<vmem>>, vector<8x1xf32>
    %398 = vector.extract_strided_slice %390 {offsets = [1, 0], sizes = [1, 256], strides = [1, 1]} : vector<8x256xf32> to vector<1x256xf32>
    %399 = vector.broadcast %397 : vector<8x1xf32> to vector<8x256xf32>
    %400 = vector.broadcast %398 : vector<1x256xf32> to vector<8x256xf32>
    %401 = arith.mulf %399, %400 : vector<8x256xf32>
    %402 = arith.addf %375, %401 : vector<8x256xf32>
    %c0_79 = arith.constant 0 : index
    %c58 = arith.constant 58 : index
    %403 = vector.load %arg2[%c0_79, %c58] : memref<8x72xf32, #tpu.memory_space<vmem>>, vector<8x1xf32>
    %404 = vector.extract_strided_slice %390 {offsets = [2, 0], sizes = [1, 256], strides = [1, 1]} : vector<8x256xf32> to vector<1x256xf32>
    %405 = vector.broadcast %403 : vector<8x1xf32> to vector<8x256xf32>
    %406 = vector.broadcast %404 : vector<1x256xf32> to vector<8x256xf32>
    %407 = arith.mulf %405, %406 : vector<8x256xf32>
    %408 = arith.addf %381, %407 : vector<8x256xf32>
    %c0_80 = arith.constant 0 : index
    %c59 = arith.constant 59 : index
    %409 = vector.load %arg2[%c0_80, %c59] : memref<8x72xf32, #tpu.memory_space<vmem>>, vector<8x1xf32>
    %410 = vector.extract_strided_slice %390 {offsets = [3, 0], sizes = [1, 256], strides = [1, 1]} : vector<8x256xf32> to vector<1x256xf32>
    %411 = vector.broadcast %409 : vector<8x1xf32> to vector<8x256xf32>
    %412 = vector.broadcast %410 : vector<1x256xf32> to vector<8x256xf32>
    %413 = arith.mulf %411, %412 : vector<8x256xf32>
    %414 = arith.addf %387, %413 : vector<8x256xf32>
    %c0_81 = arith.constant 0 : index
    %c60 = arith.constant 60 : index
    %415 = vector.load %arg2[%c0_81, %c60] : memref<8x72xf32, #tpu.memory_space<vmem>>, vector<8x1xf32>
    %416 = vector.extract_strided_slice %390 {offsets = [4, 0], sizes = [1, 256], strides = [1, 1]} : vector<8x256xf32> to vector<1x256xf32>
    %417 = vector.broadcast %415 : vector<8x1xf32> to vector<8x256xf32>
    %418 = vector.broadcast %416 : vector<1x256xf32> to vector<8x256xf32>
    %419 = arith.mulf %417, %418 : vector<8x256xf32>
    %420 = arith.addf %396, %419 : vector<8x256xf32>
    %c0_82 = arith.constant 0 : index
    %c61 = arith.constant 61 : index
    %421 = vector.load %arg2[%c0_82, %c61] : memref<8x72xf32, #tpu.memory_space<vmem>>, vector<8x1xf32>
    %422 = vector.extract_strided_slice %390 {offsets = [5, 0], sizes = [1, 256], strides = [1, 1]} : vector<8x256xf32> to vector<1x256xf32>
    %423 = vector.broadcast %421 : vector<8x1xf32> to vector<8x256xf32>
    %424 = vector.broadcast %422 : vector<1x256xf32> to vector<8x256xf32>
    %425 = arith.mulf %423, %424 : vector<8x256xf32>
    %426 = arith.addf %402, %425 : vector<8x256xf32>
    %c0_83 = arith.constant 0 : index
    %c62 = arith.constant 62 : index
    %427 = vector.load %arg2[%c0_83, %c62] : memref<8x72xf32, #tpu.memory_space<vmem>>, vector<8x1xf32>
    %428 = vector.extract_strided_slice %390 {offsets = [6, 0], sizes = [1, 256], strides = [1, 1]} : vector<8x256xf32> to vector<1x256xf32>
    %429 = vector.broadcast %427 : vector<8x1xf32> to vector<8x256xf32>
    %430 = vector.broadcast %428 : vector<1x256xf32> to vector<8x256xf32>
    %431 = arith.mulf %429, %430 : vector<8x256xf32>
    %432 = arith.addf %408, %431 : vector<8x256xf32>
    %c0_84 = arith.constant 0 : index
    %c63 = arith.constant 63 : index
    %433 = vector.load %arg2[%c0_84, %c63] : memref<8x72xf32, #tpu.memory_space<vmem>>, vector<8x1xf32>
    %434 = vector.extract_strided_slice %390 {offsets = [7, 0], sizes = [1, 256], strides = [1, 1]} : vector<8x256xf32> to vector<1x256xf32>
    %435 = vector.broadcast %433 : vector<8x1xf32> to vector<8x256xf32>
    %436 = vector.broadcast %434 : vector<1x256xf32> to vector<8x256xf32>
    %437 = arith.mulf %435, %436 : vector<8x256xf32>
    %438 = arith.addf %414, %437 : vector<8x256xf32>
    %c239_i32 = arith.constant 239 : i32
    %439 = tpu.dynamic_rotate %1 by %c239_i32 dim 1 : vector<8x256xf32>, i32 -> vector<8x256xf32>
    %440 = arith.andi %22, %26 : vector<8x256xi1>
    %cst_85 = arith.constant 0.000000e+00 : f32
    %441 = vector.broadcast %cst_85 : f32 to vector<8x256xf32>
    %442 = arith.select %440, %439, %441 : vector<8x256xi1>, vector<8x256xf32>
    %c0_86 = arith.constant 0 : index
    %c64 = arith.constant 64 : index
    %443 = vector.load %arg2[%c0_86, %c64] : memref<8x72xf32, #tpu.memory_space<vmem>>, vector<8x1xf32>
    %444 = vector.extract_strided_slice %442 {offsets = [0, 0], sizes = [1, 256], strides = [1, 1]} : vector<8x256xf32> to vector<1x256xf32>
    %445 = vector.broadcast %443 : vector<8x1xf32> to vector<8x256xf32>
    %446 = vector.broadcast %444 : vector<1x256xf32> to vector<8x256xf32>
    %447 = arith.mulf %445, %446 : vector<8x256xf32>
    %448 = arith.addf %420, %447 : vector<8x256xf32>
    %c0_87 = arith.constant 0 : index
    %c65 = arith.constant 65 : index
    %449 = vector.load %arg2[%c0_87, %c65] : memref<8x72xf32, #tpu.memory_space<vmem>>, vector<8x1xf32>
    %450 = vector.extract_strided_slice %442 {offsets = [1, 0], sizes = [1, 256], strides = [1, 1]} : vector<8x256xf32> to vector<1x256xf32>
    %451 = vector.broadcast %449 : vector<8x1xf32> to vector<8x256xf32>
    %452 = vector.broadcast %450 : vector<1x256xf32> to vector<8x256xf32>
    %453 = arith.mulf %451, %452 : vector<8x256xf32>
    %454 = arith.addf %426, %453 : vector<8x256xf32>
    %c0_88 = arith.constant 0 : index
    %c66 = arith.constant 66 : index
    %455 = vector.load %arg2[%c0_88, %c66] : memref<8x72xf32, #tpu.memory_space<vmem>>, vector<8x1xf32>
    %456 = vector.extract_strided_slice %442 {offsets = [2, 0], sizes = [1, 256], strides = [1, 1]} : vector<8x256xf32> to vector<1x256xf32>
    %457 = vector.broadcast %455 : vector<8x1xf32> to vector<8x256xf32>
    %458 = vector.broadcast %456 : vector<1x256xf32> to vector<8x256xf32>
    %459 = arith.mulf %457, %458 : vector<8x256xf32>
    %460 = arith.addf %432, %459 : vector<8x256xf32>
    %c0_89 = arith.constant 0 : index
    %c67 = arith.constant 67 : index
    %461 = vector.load %arg2[%c0_89, %c67] : memref<8x72xf32, #tpu.memory_space<vmem>>, vector<8x1xf32>
    %462 = vector.extract_strided_slice %442 {offsets = [3, 0], sizes = [1, 256], strides = [1, 1]} : vector<8x256xf32> to vector<1x256xf32>
    %463 = vector.broadcast %461 : vector<8x1xf32> to vector<8x256xf32>
    %464 = vector.broadcast %462 : vector<1x256xf32> to vector<8x256xf32>
    %465 = arith.mulf %463, %464 : vector<8x256xf32>
    %466 = arith.addf %438, %465 : vector<8x256xf32>
    %c0_90 = arith.constant 0 : index
    %c68 = arith.constant 68 : index
    %467 = vector.load %arg2[%c0_90, %c68] : memref<8x72xf32, #tpu.memory_space<vmem>>, vector<8x1xf32>
    %468 = vector.extract_strided_slice %442 {offsets = [4, 0], sizes = [1, 256], strides = [1, 1]} : vector<8x256xf32> to vector<1x256xf32>
    %469 = vector.broadcast %467 : vector<8x1xf32> to vector<8x256xf32>
    %470 = vector.broadcast %468 : vector<1x256xf32> to vector<8x256xf32>
    %471 = arith.mulf %469, %470 : vector<8x256xf32>
    %472 = arith.addf %448, %471 : vector<8x256xf32>
    %c0_91 = arith.constant 0 : index
    %c69 = arith.constant 69 : index
    %473 = vector.load %arg2[%c0_91, %c69] : memref<8x72xf32, #tpu.memory_space<vmem>>, vector<8x1xf32>
    %474 = vector.extract_strided_slice %442 {offsets = [5, 0], sizes = [1, 256], strides = [1, 1]} : vector<8x256xf32> to vector<1x256xf32>
    %475 = vector.broadcast %473 : vector<8x1xf32> to vector<8x256xf32>
    %476 = vector.broadcast %474 : vector<1x256xf32> to vector<8x256xf32>
    %477 = arith.mulf %475, %476 : vector<8x256xf32>
    %478 = arith.addf %454, %477 : vector<8x256xf32>
    %c0_92 = arith.constant 0 : index
    %c70 = arith.constant 70 : index
    %479 = vector.load %arg2[%c0_92, %c70] : memref<8x72xf32, #tpu.memory_space<vmem>>, vector<8x1xf32>
    %480 = vector.extract_strided_slice %442 {offsets = [6, 0], sizes = [1, 256], strides = [1, 1]} : vector<8x256xf32> to vector<1x256xf32>
    %481 = vector.broadcast %479 : vector<8x1xf32> to vector<8x256xf32>
    %482 = vector.broadcast %480 : vector<1x256xf32> to vector<8x256xf32>
    %483 = arith.mulf %481, %482 : vector<8x256xf32>
    %484 = arith.addf %460, %483 : vector<8x256xf32>
    %c0_93 = arith.constant 0 : index
    %c71 = arith.constant 71 : index
    %485 = vector.load %arg2[%c0_93, %c71] : memref<8x72xf32, #tpu.memory_space<vmem>>, vector<8x1xf32>
    %486 = vector.extract_strided_slice %442 {offsets = [7, 0], sizes = [1, 256], strides = [1, 1]} : vector<8x256xf32> to vector<1x256xf32>
    %487 = vector.broadcast %485 : vector<8x1xf32> to vector<8x256xf32>
    %488 = vector.broadcast %486 : vector<1x256xf32> to vector<8x256xf32>
    %489 = arith.mulf %487, %488 : vector<8x256xf32>
    %490 = arith.addf %466, %489 : vector<8x256xf32>
    %491 = arith.addf %472, %478 : vector<8x256xf32>
    %492 = arith.addf %491, %484 : vector<8x256xf32>
    %493 = arith.addf %492, %490 : vector<8x256xf32>
    %c0_94 = arith.constant 0 : index
    %c0_95 = arith.constant 0 : index
    %494 = vector.load %arg3[%c0_94, %c0_95] : memref<4x3xf32, #tpu.memory_space<vmem>>, vector<4x1xf32>
    %c0_96 = arith.constant 0 : index
    %c1_97 = arith.constant 1 : index
    %495 = vector.load %arg3[%c0_96, %c1_97] : memref<4x3xf32, #tpu.memory_space<vmem>>, vector<4x1xf32>
    %c0_98 = arith.constant 0 : index
    %c2_99 = arith.constant 2 : index
    %496 = vector.load %arg3[%c0_98, %c2_99] : memref<4x3xf32, #tpu.memory_space<vmem>>, vector<4x1xf32>
    %497 = vector.extract_strided_slice %493 {offsets = [0, 0], sizes = [4, 256], strides = [1, 1]} : vector<8x256xf32> to vector<4x256xf32>
    %498 = vector.shape_cast %497 : vector<4x256xf32> to vector<1x4x256xf32>
    %cst_100 = arith.constant dense<0.000000e+00> : vector<1xf32>
    %499 = vector.multi_reduction <add>, %498, %cst_100 [1, 2] : vector<1x4x256xf32> to vector<1xf32>
    %500 = vector.shape_cast %499 : vector<1xf32> to vector<1x1x1xf32>
    %501 = vector.extract %500[0, 0, 0] : f32 from vector<1x1x1xf32>
    %cst_101 = arith.constant 1.024000e+03 : f32
    %502 = arith.divf %501, %cst_101 : f32
    %503 = vector.broadcast %502 : f32 to vector<4x256xf32>
    %504 = arith.subf %497, %503 : vector<4x256xf32>
    %505 = arith.mulf %504, %504 : vector<4x256xf32>
    %506 = vector.shape_cast %505 : vector<4x256xf32> to vector<1x4x256xf32>
    %cst_102 = arith.constant dense<0.000000e+00> : vector<1xf32>
    %507 = vector.multi_reduction <add>, %506, %cst_102 [1, 2] : vector<1x4x256xf32> to vector<1xf32>
    %508 = vector.shape_cast %507 : vector<1xf32> to vector<1x1x1xf32>
    %509 = vector.extract %508[0, 0, 0] : f32 from vector<1x1x1xf32>
    %cst_103 = arith.constant 1.024000e+03 : f32
    %510 = arith.divf %509, %cst_103 : f32
    %cst_104 = arith.constant 9.99999974E-6 : f32
    %511 = arith.addf %510, %cst_104 : f32
    %512 = math.rsqrt %511 : f32
    %513 = vector.broadcast %512 : f32 to vector<4x1xf32>
    %514 = arith.mulf %494, %513 : vector<4x1xf32>
    %515 = vector.broadcast %514 : vector<4x1xf32> to vector<4x256xf32>
    %516 = arith.mulf %504, %515 : vector<4x256xf32>
    %517 = vector.broadcast %495 : vector<4x1xf32> to vector<4x256xf32>
    %518 = arith.addf %516, %517 : vector<4x256xf32>
    %cst_105 = arith.constant 0.000000e+00 : f32
    %519 = vector.broadcast %cst_105 : f32 to vector<4x256xf32>
    %520 = arith.cmpf ogt, %518, %519 : vector<4x256xf32>
    %521 = vector.broadcast %496 : vector<4x1xf32> to vector<4x256xf32>
    %522 = arith.mulf %521, %518 : vector<4x256xf32>
    %523 = arith.select %520, %518, %522 : vector<4x256xi1>, vector<4x256xf32>
    %524 = vector.extract_strided_slice %493 {offsets = [4, 0], sizes = [4, 256], strides = [1, 1]} : vector<8x256xf32> to vector<4x256xf32>
    %525 = vector.shape_cast %524 : vector<4x256xf32> to vector<1x4x256xf32>
    %cst_106 = arith.constant dense<0.000000e+00> : vector<1xf32>
    %526 = vector.multi_reduction <add>, %525, %cst_106 [1, 2] : vector<1x4x256xf32> to vector<1xf32>
    %527 = vector.shape_cast %526 : vector<1xf32> to vector<1x1x1xf32>
    %528 = vector.extract %527[0, 0, 0] : f32 from vector<1x1x1xf32>
    %cst_107 = arith.constant 1.024000e+03 : f32
    %529 = arith.divf %528, %cst_107 : f32
    %530 = vector.broadcast %529 : f32 to vector<4x256xf32>
    %531 = arith.subf %524, %530 : vector<4x256xf32>
    %532 = arith.mulf %531, %531 : vector<4x256xf32>
    %533 = vector.shape_cast %532 : vector<4x256xf32> to vector<1x4x256xf32>
    %cst_108 = arith.constant dense<0.000000e+00> : vector<1xf32>
    %534 = vector.multi_reduction <add>, %533, %cst_108 [1, 2] : vector<1x4x256xf32> to vector<1xf32>
    %535 = vector.shape_cast %534 : vector<1xf32> to vector<1x1x1xf32>
    %536 = vector.extract %535[0, 0, 0] : f32 from vector<1x1x1xf32>
    %cst_109 = arith.constant 1.024000e+03 : f32
    %537 = arith.divf %536, %cst_109 : f32
    %cst_110 = arith.constant 9.99999974E-6 : f32
    %538 = arith.addf %537, %cst_110 : f32
    %539 = math.rsqrt %538 : f32
    %540 = vector.broadcast %539 : f32 to vector<4x1xf32>
    %541 = arith.mulf %494, %540 : vector<4x1xf32>
    %542 = vector.broadcast %541 : vector<4x1xf32> to vector<4x256xf32>
    %543 = arith.mulf %531, %542 : vector<4x256xf32>
    %544 = vector.broadcast %495 : vector<4x1xf32> to vector<4x256xf32>
    %545 = arith.addf %543, %544 : vector<4x256xf32>
    %cst_111 = arith.constant 0.000000e+00 : f32
    %546 = vector.broadcast %cst_111 : f32 to vector<4x256xf32>
    %547 = arith.cmpf ogt, %545, %546 : vector<4x256xf32>
    %548 = vector.broadcast %496 : vector<4x1xf32> to vector<4x256xf32>
    %549 = arith.mulf %548, %545 : vector<4x256xf32>
    %550 = arith.select %547, %545, %549 : vector<4x256xi1>, vector<4x256xf32>
    %551 = tpu.concatenate %523, %550 in 0 : vector<4x256xf32>, vector<4x256xf32> -> vector<8x256xf32>
    %c0_112 = arith.constant 0 : index
    %c0_113 = arith.constant 0 : index
    %c0_114 = arith.constant 0 : index
    %552 = vector.load %arg4[%c0_112, %c0_113, %c0_114] : memref<1x8x256xf32, #tpu.memory_space<vmem>>, vector<1x8x256xf32>
    %553 = vector.shape_cast %552 : vector<1x8x256xf32> to vector<8x256xf32>
    %554 = vector.shape_cast %551 : vector<8x256xf32> to vector<1x8x256xf32>
    tpu.vector_store %arg4[%c0_112, %c0_113, %c0_114], %554 {strides = array<i32>} : memref<1x8x256xf32, #tpu.memory_space<vmem>>, vector<1x8x256xf32>,
    return
  }
  func.func @transform_0(%arg0: i32) -> (i32, i32, i32) {
    %c0_i32 = arith.constant 0 : i32
    %c0_i32_0 = arith.constant 0 : i32
    %c0_i32_1 = arith.constant 0 : i32
    return %arg0, %c0_i32, %c0_i32_0 : i32, i32, i32
  }
  func.func @transform_1(%arg0: i32) -> (i32, i32) {
    %c0_i32 = arith.constant 0 : i32
    %c0_i32_0 = arith.constant 0 : i32
    %c0_i32_1 = arith.constant 0 : i32
    return %c0_i32, %c0_i32_0 : i32, i32
  }
  func.func @transform_2(%arg0: i32) -> (i32, i32) {
    %c0_i32 = arith.constant 0 : i32
    %c0_i32_0 = arith.constant 0 : i32
    %c0_i32_1 = arith.constant 0 : i32
    return %c0_i32, %c0_i32_0 : i32, i32
  }
  func.func @transform_3(%arg0: i32) -> (i32, i32, i32) {
    %c0_i32 = arith.constant 0 : i32
    %c0_i32_0 = arith.constant 0 : i32
    %c0_i32_1 = arith.constant 0 : i32
    return %arg0, %c0_i32, %c0_i32_0 : i32, i32, i32
  }
}

</mosaic_0001>

<bundles_post_ra>
// kernel: standard_conv_layers_forward.1
= control target key start
LH: loop header
LB: loop body
LE: loop exit
PB: predicated region body
PF: predicated region fallthrough
CT: control target
= control target key end

     0   :  { %v1624_v0 = vmov 4   ;;  %v1625_v2 = vmov 0   ;;  %v1626_v3 = vmov 5   ;;  %v1627_v4 = vmov 1   ;;  %s1631_s16 = smov 17   ;;  %s1636_s19 = smov 16   ;;  %s2363_s1 = inlined_call_operand.vmem [shape: f32[8,72], index: 1, kind: input, shape index: {}]   ;;  %s2364_s0 = inlined_call_operand.vmem [shape: f32[1,8,256], index: 0, kind: input, shape index: {}]   ;;  %s2365_s2 = inlined_call_operand.vmem [shape: f32[4,3], index: 2, kind: input, shape index: {}]   ;;  %s2366_s3 = inlined_call_operand.vmem [shape: f32[1,8,256], index: 3, kind: output, shape index: {}]  }
   0x1   :  { %1543 = vset.pattern.permute.xlu1 %v1624_v0  ;;  %v1727_v1 = vld [vmem:[%s2363_s1] sm:$0xff]  ;;  %1541 = vset.pattern.permute.xlu0 %v1625_v2  ;;  %v1628_v5 = vmov 2   ;;  %v1629_v6 = vmov 6   ;;  %v1630_v8 = vmov 8   ;;  %v1632_v9 = vmov 3   ;;  %v1750_v11 = vld [vmem:[%s2364_s0 + $0x8] sm:$0xff] }
   0x2   :  { %129 = vperm.xlu1 %1543, %v1727_v1   ;;  %65 = vperm.xlu0 %1541, %v1727_v1   ;;  %v1741_v7 = vld [vmem:[%s2364_s0] sm:$0xff]  ;;  %v1633_v10 = vmov 9   ;;  %v1634_v12 = vmov 12   ;;  %v1635_v13 = vmov 7   ;;  %v1637_v14 = vmov 14   ;;  %s1649_s20 = smov 1  }
   0x3   :  { %v1638_v15 = vmov 10   ;;  %v1639_v16 = vmov 15   ;;  %v1640_v17 = vmov 13   ;;  %v1641_v18 = vmov 21   ;;  %s1653_s21 = smov 15   ;;  %s1660_s22 = smov 127  }
   0x4   :  { %v1642_v19 = vmov 11   ;;  %v1643_v20 = vmov 19   ;;  %v1644_v21 = vmov 16   ;;  %v1645_v22 = vmov 25   ;;  %s1667_s23 = smov 113   ;;  %s1680_s24 = smov 111  }
   0x5   :  { %v1646_v23 = vmov 17   ;;  %v1647_v24 = vmov 28   ;;  %v1648_v25 = vmov 18   ;;  %v1650_v26 = vmov 30   ;;  %s1696_s25 = smov 112  }
   0x6   :  { %1544 = vset.pattern.permute.xlu1 %v1626_v3  ;;  %1542 = vset.pattern.permute.xlu0 %v1627_v4  ;;  %v1651_v27 = vmov 20   ;;  %v1652_v28 = vmov 31   ;;  %v1654_v29 = vmov 22   ;;  %v1655_v30 = vmov 37  }
   0x7   :  { %145 = vperm.xlu1 %1544, %v1727_v1   ;;  %81 = vperm.xlu0 %1542, %v1727_v1   ;;  %v1656_v31 = vmov 40   ;;  %v1657_v32 = vmov 24   ;;  %v1658_v33 = vmov 42   ;;  %v1659_v34 = vmov 23  }
   0x8   :  { %v1661_v35 = vmov 43   ;;  %v1662_v36 = vmov 26   ;;  %v1663_v37 = vmov 49   ;;  %v1664_v38 = vmov 29  }
   0x9   :  { %v1665_v39 = vmov 52   ;;  %v1666_v40 = vmov 27   ;;  %v1668_v41 = vmov 54   ;;  %v1669_v42 = vmov 32  }
   0xa   :  { %v1670_v43 = vmov 55   ;;  %v1671_v44 = vmov 33   ;;  %v1672_v45 = vmov 61   ;;  %v1673_v46 = vmov 34  }
   0xb   :  { %1545 = vset.pattern.permute.xlu1 %v1628_v5  ;;  %1546 = vset.pattern.permute.xlu0 %v1629_v6  ;;  %v1674_v47 = vmov 59   ;;  %v1675_v48 = vmov 36   ;;  %v1676_v51 = vmov 65   ;;  %v1677_v52 = vmov 35  }
   0xc   :  { %97 = vperm.xlu1 %1545, %v1727_v1   ;;  %161 = vperm.xlu0 %1546, %v1727_v1   ;;  %v16_v55 = vlaneseq  ;;  %v1678_v56 = vmov 68   ;;  %v1679_v57 = vmov 38   ;;  %v1681_v61 = vmov 41  }
   0xd   :  { %v1682_v62 = vmov 70  }
   0xe   :  { %v1818_v60 = vand.u32 127, %v16_v55 }
  0x10   :  { %1547 = vset.pattern.permute.xlu1 %v1630_v8  ;;  %51 = vrot.lane.b32.xlu0 %v1741_v7, %s1631_s16  ;;  %v1826_v3 = vadd.s32 128, %v1818_v60  ;;  %v23_v6 = vand.u32 15, %v1818_v60  ;;  %v1683_v8 = vmov 39   ;;  %vm43_vm0 = vcmp.ge.s32.totalorder %v1818_v60, 16 }
  0x11   :  { %202 = vperm.xlu1 %1547, %v1727_v1   ;;  %1549 = vset.pattern.permute.xlu0 %v1632_v9  ;;  %vm55_vm2 = vcmp.lt.s32.totalorder %v1818_v60, 17  ;;  %vm196_vm5 = vcmp.lt.s32.totalorder %v1818_v60, 16  ;;  %vm333_vm7 = vcmp.lt.s32.totalorder %v1818_v60, 15  ;;  %vm472_vm10 = vcmp.lt.s32.totalorder %v1818_v60, 1 }
  0x12   :  { %v30_v9 = vand.u32 15, %v1826_v3  ;;  %vm1837_vm1 = vcmp.ge.s32.totalorder %v23_v6, 1  ;;  %vm1960_vm6 = vcmp.le.s32.totalorder %v23_v6, 14  ;;  %vm737_vm11 = vcmp.lt.s32.totalorder %v1818_v60, 127 }
  0x13   :  { %vm58_vm4 = vmand %vm43_vm0, %vm1837_vm1  ;;  %vm46_vm12 = vcmp.lt.s32.totalorder %v1826_v3, 240  ;;  %vm874_vm13 = vcmp.lt.s32.totalorder %v1818_v60, 113  ;;  %vm1013_vm15 = vcmp.lt.s32.totalorder %v1818_v60, 112 }
  0x14   :  { %113 = vperm.xlu0 %1549, %v1727_v1   ;;  %vm1845_vm3 = vcmp.ge.s32.totalorder %v30_v9, 1  ;;  %vm1967_vm8 = vcmp.le.s32.totalorder %v30_v9, 14  ;;  %vm336_vm9 = vmand %vm43_vm0, %vm1960_vm6 }
  0x15   :  { %1548 = vset.pattern.permute.xlu1 %v1633_v10  ;;  %v69_v10 = vshrl.u32 %v16_v55, 7  ;;  %vm878_vm14 = vmand %vm46_vm12, %vm1845_vm3 }
  0x16   :  { %218 = vperm.xlu1 %1548, %v1727_v1  }
  0x18   :  { %1552 = vset.pattern.permute.xlu0 %v1634_v12 }
  0x19   :  { %266 = vperm.xlu0 %1552, %v1727_v1  }
  0x1a   :  { %53 = vrot.lane.b32.xlu1 %v1750_v11, %s1631_s16 }
  0x1b   :  { %1550 = vset.pattern.permute.xlu1 %v1635_v13 }
  0x1d   :  { %194 = vrot.lane.b32.xlu0 %v1750_v11, %s1636_s19 }
  0x1e   :  { %177 = vperm.xlu1 %1550, %v1727_v1   ;;  %1555 = vset.pattern.permute.xlu0 %v1637_v14 }
  0x21   :  { %298 = vperm.xlu0 %1555, %v1727_v1  }
  0x22   :  { %1551 = vset.pattern.permute.xlu1 %v1638_v15  ;;  %v1684_v15 = vmov 44  }
  0x23   :  { %234 = vperm.xlu1 %1551, %v1727_v1  }
  0x25   :  { %1558 = vset.pattern.permute.xlu0 %v1639_v16 }
  0x26   :  { %314 = vperm.xlu0 %1558, %v1727_v1  }
  0x27   :  { %1553 = vset.pattern.permute.xlu1 %v1640_v17  ;;  %v1853_v17 = vsub.s32 0, %v69_v10 }
  0x28   :  { %282 = vperm.xlu1 %1553, %v1727_v1  }
  0x2a   :  { %1561 = vset.pattern.permute.xlu0 %v1641_v18  ;;  %v1855_v18 = vsub.s32 4, %v69_v10 }
  0x2b   :  { %421 = vperm.xlu0 %1561, %v1727_v1  }
  0x2c   :  { %192 = vrot.lane.b32.xlu1 %v1741_v7, %s1636_s19 }
  0x2d   :  { %1554 = vset.pattern.permute.xlu1 %v1642_v19 }
  0x2f   :  { %1562 = vset.pattern.permute.xlu0 %v1643_v20  ;;  %v1858_v20 = vsub.s32 7, %v69_v10 }
  0x30   :  { %250 = vperm.xlu1 %1554, %v1727_v1   ;;  %389 = vperm.xlu0 %1562, %v1727_v1  }
  0x34   :  { %1556 = vset.pattern.permute.xlu1 %v1644_v21  ;;  %1565 = vset.pattern.permute.xlu0 %v1645_v22  ;;  %v1860_v21 = vsub.s32 3, %v69_v10  ;;  %v1862_v22 = vsub.s32 1, %v69_v10 }
  0x35   :  { %341 = vperm.xlu1 %1556, %v1727_v1   ;;  %494 = vperm.xlu0 %1565, %v1727_v1  }
  0x39   :  { %1557 = vset.pattern.permute.xlu1 %v1646_v23  ;;  %1568 = vset.pattern.permute.xlu0 %v1647_v24  ;;  %v1864_v23 = vsub.s32 5, %v69_v10 }
  0x3a   :  { %357 = vperm.xlu1 %1557, %v1727_v1   ;;  %542 = vperm.xlu0 %1568, %v1727_v1  }
  0x3e   :  { %1559 = vset.pattern.permute.xlu1 %v1648_v25  ;;  %470 = vrot.lane.b32.xlu0 %v1750_v11, %s1649_s20 }
  0x3f   :  { %373 = vperm.xlu1 %1559, %v1727_v1   ;;  %1571 = vset.pattern.permute.xlu0 %v1650_v26 }
  0x42   :  { %574 = vperm.xlu0 %1571, %v1727_v1  }
  0x43   :  { %1560 = vset.pattern.permute.xlu1 %v1651_v27  ;;  %v1868_v27 = vsub.s32 2, %v69_v10 }
  0x44   :  { %405 = vperm.xlu1 %1560, %v1727_v1  }
  0x46   :  { %1574 = vset.pattern.permute.xlu0 %v1652_v28 }
  0x47   :  { %590 = vperm.xlu0 %1574, %v1727_v1  }
  0x48   :  { %329 = vrot.lane.b32.xlu1 %v1741_v7, %s1653_s21 }
  0x49   :  { %1563 = vset.pattern.permute.xlu1 %v1654_v29 }
  0x4b   :  { %1577 = vset.pattern.permute.xlu0 %v1655_v30  ;;  %v1872_v30 = vsub.s32 6, %v69_v10 }
  0x4c   :  { %331 = vrot.lane.b32.xlu1 %v1750_v11, %s1653_s21  ;;  %686 = vperm.xlu0 %1577, %v1727_v1  }
  0x50   :  { %437 = vperm.xlu1 %1563, %v1727_v1   ;;  %1580 = vset.pattern.permute.xlu0 %v1656_v31 }
  0x51   :  { %743 = vperm.xlu0 %1580, %v1727_v1  }
  0x54   :  { %1564 = vset.pattern.permute.xlu1 %v1657_v32 }
  0x55   :  { %478 = vperm.xlu1 %1564, %v1727_v1   ;;  %1583 = vset.pattern.permute.xlu0 %v1658_v33 }
  0x56   :  { %775 = vperm.xlu0 %1583, %v1727_v1  }
  0x59   :  { %1566 = vset.pattern.permute.xlu1 %v1659_v34 }
  0x5a   :  { %453 = vperm.xlu1 %1566, %v1727_v1   ;;  %733 = vrot.lane.b32.xlu0 %v1741_v7, %s1660_s22 }
  0x5b   :  { %1586 = vset.pattern.permute.xlu0 %v1661_v35 }
  0x5e   :  { %1567 = vset.pattern.permute.xlu1 %v1662_v36  ;;  %791 = vperm.xlu0 %1586, %v1727_v1  }
  0x5f   :  { %510 = vperm.xlu1 %1567, %v1727_v1  }
  0x62   :  { %1589 = vset.pattern.permute.xlu0 %v1663_v37 }
  0x63   :  { %1569 = vset.pattern.permute.xlu1 %v1664_v38  ;;  %898 = vperm.xlu0 %1589, %v1727_v1   ;;  %v1685_v38 = vmov 45  }
  0x64   :  { %558 = vperm.xlu1 %1569, %v1727_v1  }
  0x67   :  { %1592 = vset.pattern.permute.xlu0 %v1665_v39 }
  0x68   :  { %468 = vrot.lane.b32.xlu1 %v1741_v7, %s1649_s20  ;;  %946 = vperm.xlu0 %1592, %v1727_v1  }
  0x69   :  { %1570 = vset.pattern.permute.xlu1 %v1666_v40 }
  0x6c   :  { %526 = vperm.xlu1 %1570, %v1727_v1   ;;  %872 = vrot.lane.b32.xlu0 %v1750_v11, %s1667_s23 }
  0x6d   :  { %1595 = vset.pattern.permute.xlu0 %v1668_v41 }
  0x70   :  { %1572 = vset.pattern.permute.xlu1 %v1669_v42  ;;  %978 = vperm.xlu0 %1595, %v1727_v1  }
  0x71   :  { %606 = vperm.xlu1 %1572, %v1727_v1  }
  0x74   :  { %1598 = vset.pattern.permute.xlu0 %v1670_v43 }
  0x75   :  { %1573 = vset.pattern.permute.xlu1 %v1671_v44  ;;  %994 = vperm.xlu0 %1598, %v1727_v1  }
  0x76   :  { %622 = vperm.xlu1 %1573, %v1727_v1  }
  0x79   :  { %1601 = vset.pattern.permute.xlu0 %v1672_v45 }
  0x7a   :  { %1575 = vset.pattern.permute.xlu1 %v1673_v46  ;;  %1099 = vperm.xlu0 %1601, %v1727_v1  }
  0x7b   :  { %638 = vperm.xlu1 %1575, %v1727_v1  }
  0x7e   :  { %1602 = vset.pattern.permute.xlu0 %v1674_v47 }
  0x7f   :  { %1576 = vset.pattern.permute.xlu1 %v1675_v48  ;;  %1067 = vperm.xlu0 %1602, %v1727_v1  }
  0x80   :  { %670 = vperm.xlu1 %1576, %v1727_v1  }
  0x81   :  { %v1802_v49 = vpop.permute.xlu1 %129  ;;  %v1804_v50 = vpop.permute.xlu0 %65 }
  0x83   :  { %1605 = vset.pattern.permute.xlu0 %v1676_v51 }
  0x84   :  { %1578 = vset.pattern.permute.xlu1 %v1677_v52  ;;  %1174 = vperm.xlu0 %1605, %v1727_v1  }
  0x85   :  { %654 = vperm.xlu1 %1578, %v1727_v1  }
  0x86   :  { %v1808_v53 = vpop.permute.xlu1 %145  ;;  %v1810_v54 = vpop.permute.xlu0 %81 }
  0x88   :  { %1608 = vset.pattern.permute.xlu0 %v1678_v56 }
  0x89   :  { %1579 = vset.pattern.permute.xlu1 %v1679_v57  ;;  %1222 = vperm.xlu0 %1608, %v1727_v1  }
  0x8a   :  { %702 = vperm.xlu1 %1579, %v1727_v1  }
  0x8b   :  { %v1814_v58 = vpop.permute.xlu1 %97  ;;  %v1816_v59 = vpop.permute.xlu0 %161 }
  0x8d   :  { %1148 = vrot.lane.b32.xlu0 %v1750_v11, %s1680_s24 }
  0x8e   :  { %1581 = vset.pattern.permute.xlu1 %v1681_v61  ;;  %1611 = vset.pattern.permute.xlu0 %v1682_v62 }
  0x8f   :  { %759 = vperm.xlu1 %1581, %v1727_v1   ;;  %v52_v63 = vpop.permute.xlu0 %51 }
  0x90   :  { %v1823_v0 = vpop.permute.xlu1 %202 }
  0x91   :  { %1254 = vperm.xlu0 %1611, %v1727_v1  }
  0x93   :  { %1582 = vset.pattern.permute.xlu1 %v1683_v8  ;;  %v114_v12 = vpop.permute.xlu0 %113 }
  0x94   :  { %718 = vperm.xlu1 %1582, %v1727_v1  }
  0x95   :  { %v1832_v13 = vpop.permute.xlu1 %218  ;;  %1613 = vset.pattern.permute.xlu0 %v1625_v2 }
  0x98   :  { %1584 = vset.pattern.permute.xlu1 %v1684_v15  ;;  %v1866_v26 = vpop.permute.xlu0 %266 }
  0x99   :  { %v54_v19 = vpop.permute.xlu1 %53  ;;  %807 = vperm.xlu1 %1584, %v1727_v1  }
  0x9a   :  { %v56_v24 = vsel %vm55_vm2, %v52_v63, %v54_v19  ;;  %v57_v25 = vsel %vm55_vm2, %v54_v19, %v52_v63  ;;  %vm1292_vm2 = vcmask 1043456  }
  0x9b   :  { %v60_v28 = vsel %vm58_vm4, %v57_v25, 0.0  ;;  %v61_v29 = vsel %vm1845_vm3, %v56_v24, 0.0  ;;  %v1686_v24 = vmov 46  }
  0x9c   :  { %v71_v31 = vrot.slane %v60_v28, %v1853_v17  ;;  %v75_v32 = vrot.slane %v61_v29, %v1853_v17  ;;  %v135_v33 = vrot.slane %v60_v28, %v1855_v18  ;;  %v139_v34 = vrot.slane %v61_v29, %v1855_v18  ;;  %v195_v51 = vpop.permute.xlu0 %194 }
  0x9d   :  { %v178_v35 = vpop.permute.xlu1 %177  ;;  %v183_v36 = vrot.slane %v60_v28, %v1858_v20  ;;  %v187_v37 = vrot.slane %v61_v29, %v1858_v20  ;;  %1585 = vset.pattern.permute.xlu1 %v1685_v38  ;;  %v119_v39 = vrot.slane %v60_v28, %v1860_v21  ;;  %v123_v40 = vrot.slane %v61_v29, %v1860_v21 }
  0x9e   :  { %823 = vperm.xlu1 %1585, %v1727_v1   ;;  %v87_v41 = vrot.slane %v60_v28, %v1862_v22  ;;  %v91_v42 = vrot.slane %v61_v29, %v1862_v22  ;;  %v151_v43 = vrot.slane %v60_v28, %v1864_v23  ;;  %v155_v44 = vrot.slane %v61_v29, %v1864_v23 }
  0x9f   :  { %v188_v45 = vmul.f32 %v183_v36, %v178_v35  ;;  %v189_v46 = vmul.f32 %v187_v37, %v178_v35  ;;  %v124_v47 = vmul.f32 %v119_v39, %v114_v12  ;;  %v125_v48 = vmul.f32 %v123_v40, %v114_v12 }
  0xa0   :  { %v92_v52 = vmul.f32 %v87_v41, %v1810_v54  ;;  %v93_v55 = vmul.f32 %v91_v42, %v1810_v54  ;;  %v156_v56 = vmul.f32 %v151_v43, %v1808_v53  ;;  %v157_v57 = vmul.f32 %v155_v44, %v1808_v53 }
  0xa1   :  { %v190_v61 = vadd.f32 %v188_v45, %v124_v47  ;;  %v191_v62 = vadd.f32 %v189_v46, %v125_v48  ;;  %v103_v63 = vrot.slane %v60_v28, %v1868_v27  ;;  %v107_v8 = vrot.slane %v61_v29, %v1868_v27 }
  0xa2   :  { %v235_v10 = vpop.permute.xlu1 %234  ;;  %735 = vrot.lane.b32.xlu1 %v1750_v11, %s1660_s22  ;;  %v158_v12 = vadd.f32 %v156_v56, %v92_v52  ;;  %v159_v15 = vadd.f32 %v157_v57, %v93_v55  ;;  %v167_v19 = vrot.slane %v60_v28, %v1872_v30  ;;  %v171_v54 = vrot.slane %v61_v29, %v1872_v30  ;;  %v299_v29 = vpop.permute.xlu0 %298 }
  0xa3   :  { %1587 = vset.pattern.permute.xlu1 %v1686_v24  ;;  %v108_v53 = vmul.f32 %v103_v63, %v1814_v58  ;;  %v109_v25 = vmul.f32 %v107_v8, %v1814_v58  ;;  %v76_v35 = vmul.f32 %v71_v31, %v1804_v50  ;;  %v77_v36 = vmul.f32 %v75_v32, %v1804_v50 }
  0xa4   :  { %v172_v37 = vmul.f32 %v167_v19, %v1816_v59  ;;  %v173_v38 = vmul.f32 %v171_v54, %v1816_v59  ;;  %v140_v39 = vmul.f32 %v135_v33, %v1802_v49  ;;  %v141_v28 = vmul.f32 %v139_v34, %v1802_v49 }
  0xa5   :  { %v1687_v50 = vmov 48  }
  0xa6   :  { %839 = vperm.xlu1 %1587, %v1727_v1   ;;  %v174_v40 = vadd.f32 %v172_v37, %v108_v53  ;;  %v175_v41 = vadd.f32 %v173_v38, %v109_v25  ;;  %v1906_v42 = vadd.f32 %v140_v39, %v76_v35  ;;  %v143_v58 = vadd.f32 %v141_v28, %v77_v36  ;;  %v315_v33 = vpop.permute.xlu0 %314 }
  0xa7   :  { %v283_v43 = vpop.permute.xlu1 %282 }
  0xaa   :  { %1588 = vset.pattern.permute.xlu1 %v1687_v50 }
  0xab   :  { %882 = vperm.xlu1 %1588, %v1727_v1   ;;  %v193_v59 = vpop.permute.xlu1 %192 }
  0xac   :  { %v197_v31 = vsel %vm196_vm5, %v193_v59, %v195_v51  ;;  %v198_v32 = vsel %vm196_vm5, %v195_v51, %v193_v59  ;;  %v1688_v51 = vmov 47  }
  0xad   :  { %v199_v49 = vsel %vm43_vm0, %v198_v32, 0.0  ;;  %v212_v34 = vrot.slane %v197_v31, %v1853_v17  ;;  %v324_v44 = vrot.slane %v197_v31, %v1858_v20  ;;  %v260_v45 = vrot.slane %v197_v31, %v1860_v21 }
  0xae   :  { %v320_v46 = vrot.slane %v199_v49, %v1858_v20  ;;  %v256_v47 = vrot.slane %v199_v49, %v1860_v21  ;;  %v224_v48 = vrot.slane %v199_v49, %v1862_v22  ;;  %v228_v52 = vrot.slane %v197_v31, %v1862_v22 }
  0xaf   :  { %v326_v55 = vmul.f32 %v324_v44, %v315_v33  ;;  %1590 = vset.pattern.permute.xlu1 %v1688_v51  ;;  %v251_v56 = vpop.permute.xlu1 %250  ;;  %v288_v57 = vrot.slane %v199_v49, %v1864_v23  ;;  %v292_v63 = vrot.slane %v197_v31, %v1864_v23  ;;  %v240_v8 = vrot.slane %v199_v49, %v1868_v27 }
  0xb0   :  { %v325_v19 = vmul.f32 %v320_v46, %v315_v33  ;;  %v261_v54 = vmul.f32 %v256_v47, %v251_v56  ;;  %v262_v24 = vmul.f32 %v260_v45, %v251_v56  ;;  %855 = vperm.xlu1 %1590, %v1727_v1   ;;  %v229_v53 = vmul.f32 %v224_v48, %v1832_v13 }
  0xb1   :  { %v230_v25 = vmul.f32 %v228_v52, %v1832_v13  ;;  %v293_v35 = vmul.f32 %v288_v57, %v283_v43  ;;  %v294_v36 = vmul.f32 %v292_v63, %v283_v43  ;;  %v244_v37 = vrot.slane %v197_v31, %v1868_v27 }
  0xb2   :  { %v263_v38 = vadd.f32 %v261_v54, %v190_v61  ;;  %v264_v39 = vadd.f32 %v262_v24, %v191_v62  ;;  %v231_v28 = vadd.f32 %v229_v53, %v158_v12  ;;  %v245_v50 = vmul.f32 %v240_v8, %v235_v10  ;;  %v422_v53 = vpop.permute.xlu0 %421 }
  0xb3   :  { %v232_v59 = vadd.f32 %v230_v25, %v159_v15  ;;  %v246_v32 = vmul.f32 %v244_v37, %v235_v10  ;;  %v304_v33 = vrot.slane %v199_v49, %v1872_v30  ;;  %v308_v44 = vrot.slane %v197_v31, %v1872_v30 }
  0xb4   :  { %v1689_v45 = vmov 50   ;;  %v1928_v46 = vpop.permute.xlu1 %341  ;;  %v1930_v47 = vadd.f32 %v293_v35, %v231_v28  ;;  %v247_v13 = vadd.f32 %v245_v50, %v174_v40  ;;  %v1932_v43 = vadd.f32 %v325_v19, %v263_v38 }
  0xb5   :  { %1591 = vset.pattern.permute.xlu1 %v1689_v45  ;;  %v1934_v48 = vadd.f32 %v326_v55, %v264_v39  ;;  %v1937_v61 = vadd.f32 %v294_v36, %v232_v59  ;;  %v248_v62 = vadd.f32 %v246_v32, %v175_v41  ;;  %v309_v10 = vmul.f32 %v304_v33, %v299_v29 }
  0xb6   :  { %914 = vperm.xlu1 %1591, %v1727_v1   ;;  %v310_v12 = vmul.f32 %v308_v44, %v299_v29  ;;  %v208_v15 = vrot.slane %v199_v49, %v1853_v17  ;;  %v214_v52 = vmul.f32 %v212_v34, %v1823_v0  ;;  %v272_v51 = vrot.slane %v199_v49, %v1855_v18  ;;  %v390_v32 = vpop.permute.xlu0 %389 }
  0xb7   :  { %v276_v56 = vrot.slane %v197_v31, %v1855_v18  ;;  %v311_v40 = vadd.f32 %v309_v10, %v247_v13  ;;  %v1690_v41 = vmov 53   ;;  %v1692_v31 = vmov 56  }
  0xb8   :  { %v312_v57 = vadd.f32 %v310_v12, %v248_v62  ;;  %v213_v55 = vmul.f32 %v208_v15, %v1823_v0  ;;  %v216_v63 = vadd.f32 %v214_v52, %v143_v58  ;;  %v277_v8 = vmul.f32 %v272_v51, %v1866_v26 }
  0xb9   :  { %v278_v19 = vmul.f32 %v276_v56, %v1866_v26  ;;  %v358_v29 = vpop.permute.xlu1 %357  ;;  %v1691_v58 = vmov 51   ;;  %v1693_v35 = vmov 57   ;;  %v1694_v51 = vmov 58  }
  0xba   :  { %1593 = vset.pattern.permute.xlu1 %v1690_v41  ;;  %v215_v34 = vadd.f32 %v213_v55, %v1906_v42  ;;  %vm1150_vm0 = vcmp.lt.s32.totalorder %v1818_v60, 111 }
  0xbb   :  { %962 = vperm.xlu1 %1593, %v1727_v1   ;;  %v1948_v54 = vadd.f32 %v278_v19, %v216_v63 }
  0xbc   :  { %v1950_v49 = vadd.f32 %v277_v8, %v215_v34 }
  0xbe   :  { %v374_v0 = vpop.permute.xlu1 %373 }
  0xbf   :  { %870 = vrot.lane.b32.xlu1 %v1741_v7, %s1667_s23 }
  0xc0   :  { %1594 = vset.pattern.permute.xlu1 %v1691_v58 }
  0xc3   :  { %930 = vperm.xlu1 %1594, %v1727_v1   ;;  %v1955_v26 = vpop.permute.xlu1 %405 }
  0xc7   :  { %1596 = vset.pattern.permute.xlu1 %v1692_v31  ;;  %v330_v24 = vpop.permute.xlu1 %329  ;;  %v1991_v31 = vpop.permute.xlu0 %494 }
  0xc8   :  { %1019 = vperm.xlu1 %1596, %v1727_v1  }
  0xcb   :  { %v332_v6 = vpop.permute.xlu1 %331 }
  0xcc   :  { %1597 = vset.pattern.permute.xlu1 %v1693_v35  ;;  %v334_v36 = vsel %vm333_vm7, %v330_v24, %v332_v6  ;;  %v335_v37 = vsel %vm333_vm7, %v332_v6, %v330_v24 }
  0xcd   :  { %1035 = vperm.xlu1 %1597, %v1727_v1   ;;  %v338_v38 = vsel %vm336_vm9, %v335_v37, 0.0  ;;  %v339_v39 = vsel %vm1967_vm8, %v334_v36, 0.0 }
  0xce   :  { %v363_v9 = vrot.slane %v338_v38, %v1862_v22  ;;  %v367_v28 = vrot.slane %v339_v39, %v1862_v22  ;;  %v427_v50 = vrot.slane %v338_v38, %v1864_v23  ;;  %v431_v59 = vrot.slane %v339_v39, %v1864_v23 }
  0xcf   :  { %v379_v33 = vrot.slane %v338_v38, %v1868_v27  ;;  %v383_v44 = vrot.slane %v339_v39, %v1868_v27  ;;  %v443_v45 = vrot.slane %v338_v38, %v1872_v30  ;;  %v447_v13 = vrot.slane %v339_v39, %v1872_v30  ;;  %v438_v62 = vpop.permute.xlu1 %437 }
  0xd0   :  { %v368_v10 = vmul.f32 %v363_v9, %v358_v29  ;;  %v369_v12 = vmul.f32 %v367_v28, %v358_v29  ;;  %v432_v15 = vmul.f32 %v427_v50, %v422_v53  ;;  %v433_v52 = vmul.f32 %v431_v59, %v422_v53 }
  0xd1   :  { %1599 = vset.pattern.permute.xlu1 %v1694_v51  ;;  %v384_v56 = vmul.f32 %v379_v33, %v374_v0  ;;  %v385_v55 = vmul.f32 %v383_v44, %v374_v0  ;;  %v448_v63 = vmul.f32 %v443_v45, %v438_v62  ;;  %v449_v8 = vmul.f32 %v447_v13, %v438_v62  ;;  %v2014_v13 = vpop.permute.xlu0 %542 }
  0xd2   :  { %1051 = vperm.xlu1 %1599, %v1727_v1   ;;  %v370_v19 = vadd.f32 %v368_v10, %v1930_v47  ;;  %v371_v41 = vadd.f32 %v369_v12, %v1937_v61  ;;  %v395_v34 = vrot.slane %v338_v38, %v1860_v21  ;;  %v399_v58 = vrot.slane %v339_v39, %v1860_v21 }
  0xd3   :  { %v386_v29 = vadd.f32 %v384_v56, %v311_v40  ;;  %v387_v24 = vadd.f32 %v385_v55, %v312_v57  ;;  %v1695_v61 = vmov 60   ;;  %v347_v9 = vrot.slane %v338_v38, %v1853_v17 }
  0xd4   :  { %v1993_v53 = vadd.f32 %v432_v15, %v370_v19  ;;  %v1995_v35 = vadd.f32 %v433_v52, %v371_v41  ;;  %v400_v0 = vmul.f32 %v395_v34, %v390_v32  ;;  %v401_v6 = vmul.f32 %v399_v58, %v390_v32  ;;  %v1997_v36 = vpop.permute.xlu1 %478 }
  0xd5   :  { %v1999_v37 = vadd.f32 %v448_v63, %v386_v29  ;;  %v2001_v47 = vadd.f32 %v449_v8, %v387_v24  ;;  %v351_v28 = vrot.slane %v339_v39, %v1853_v17  ;;  %v411_v50 = vrot.slane %v338_v38, %v1855_v18  ;;  %v471_v55 = vpop.permute.xlu0 %470 }
  0xd6   :  { %1600 = vset.pattern.permute.xlu1 %v1695_v61  ;;  %v402_v40 = vadd.f32 %v400_v0, %v1932_v43  ;;  %v403_v57 = vadd.f32 %v401_v6, %v1934_v48  ;;  %v415_v59 = vrot.slane %v339_v39, %v1855_v18  ;;  %v352_v32 = vmul.f32 %v347_v9, %v1928_v46 }
  0xd7   :  { %1083 = vperm.xlu1 %1600, %v1727_v1   ;;  %v353_v33 = vmul.f32 %v351_v28, %v1928_v46  ;;  %v459_v44 = vrot.slane %v338_v38, %v1858_v20  ;;  %v463_v45 = vrot.slane %v339_v39, %v1858_v20  ;;  %v416_v43 = vmul.f32 %v411_v50, %v1955_v26 }
  0xd8   :  { %v417_v48 = vmul.f32 %v415_v59, %v1955_v26  ;;  %v354_v10 = vadd.f32 %v352_v32, %v1950_v49  ;;  %v1697_v46 = vmov 62   ;;  %v1698_v63 = vmov 64  }
  0xd9   :  { %v454_v62 = vpop.permute.xlu1 %453  ;;  %v355_v12 = vadd.f32 %v353_v33, %v1948_v54  ;;  %v575_v49 = vpop.permute.xlu0 %574  ;;  %v616_v19 = vrot.slane %v1750_v11, %v1853_v17  ;;  %v612_v58 = vrot.slane %v1741_v7, %v1853_v17  ;;  %v632_v0 = vrot.slane %v1750_v11, %v1862_v22 }
  0xda   :  { %v464_v15 = vmul.f32 %v459_v44, %v454_v62  ;;  %v465_v52 = vmul.f32 %v463_v45, %v454_v62  ;;  %v2021_v38 = vadd.f32 %v416_v43, %v354_v10  ;;  %v628_v6 = vrot.slane %v1741_v7, %v1862_v22 }
  0xdb   :  { %1009 = vrot.lane.b32.xlu1 %v1741_v7, %s1696_s25  ;;  %v2023_v39 = vadd.f32 %v417_v48, %v355_v12  ;;  %v1699_v50 = vmov 63  }
  0xdc   :  { %1603 = vset.pattern.permute.xlu1 %v1697_v46  ;;  %v466_v51 = vadd.f32 %v464_v15, %v402_v40  ;;  %v467_v56 = vadd.f32 %v465_v52, %v403_v57 }
  0xdd   :  { %v591_v57 = vpop.permute.xlu0 %590 }
  0xde   :  { %v511_v26 = vpop.permute.xlu1 %510 }
  0xdf   :  { %1011 = vrot.lane.b32.xlu1 %v1750_v11, %s1696_s25 }
  0xe3   :  { %1115 = vperm.xlu1 %1603, %v1727_v1   ;;  %v2027_v54 = vpop.permute.xlu1 %558 }
  0xe7   :  { %1604 = vset.pattern.permute.xlu1 %v1698_v63  ;;  %v469_v8 = vpop.permute.xlu1 %468 }
  0xe8   :  { %1158 = vperm.xlu1 %1604, %v1727_v1   ;;  %v473_v41 = vsel %vm472_vm10, %v469_v8, %v471_v55  ;;  %v474_v34 = vsel %vm472_vm10, %v471_v55, %v469_v8 }
  0xe9   :  { %v475_v29 = vsel %vm1837_vm1, %v474_v34, 0.0  ;;  %v476_v24 = vsel %vm1845_vm3, %v473_v41, 0.0 }
  0xea   :  { %v516_v61 = vrot.slane %v475_v29, %v1868_v27  ;;  %v520_v9 = vrot.slane %v476_v24, %v1868_v27  ;;  %v580_v28 = vrot.slane %v475_v29, %v1872_v30  ;;  %v584_v40 = vrot.slane %v476_v24, %v1872_v30 }
  0xeb   :  { %v527_v59 = vpop.permute.xlu1 %526  ;;  %v532_v32 = vrot.slane %v475_v29, %v1860_v21  ;;  %v536_v33 = vrot.slane %v476_v24, %v1860_v21  ;;  %v596_v44 = vrot.slane %v475_v29, %v1858_v20  ;;  %v600_v45 = vrot.slane %v476_v24, %v1858_v20 }
  0xec   :  { %1606 = vset.pattern.permute.xlu1 %v1699_v50  ;;  %v521_v43 = vmul.f32 %v516_v61, %v511_v26  ;;  %v522_v48 = vmul.f32 %v520_v9, %v511_v26  ;;  %v585_v62 = vmul.f32 %v580_v28, %v575_v49  ;;  %v586_v10 = vmul.f32 %v584_v40, %v575_v49 }
  0xed   :  { %1131 = vperm.xlu1 %1606, %v1727_v1   ;;  %v537_v12 = vmul.f32 %v532_v32, %v527_v59  ;;  %v538_v15 = vmul.f32 %v536_v33, %v527_v59  ;;  %v601_v52 = vmul.f32 %v596_v44, %v591_v57  ;;  %v602_v46 = vmul.f32 %v600_v45, %v591_v57 }
  0xee   :  { %v523_v55 = vadd.f32 %v521_v43, %v1999_v37  ;;  %v524_v63 = vadd.f32 %v522_v48, %v2001_v47  ;;  %v484_v8 = vrot.slane %v475_v29, %v1853_v17  ;;  %v488_v41 = vrot.slane %v476_v24, %v1853_v17 }
  0xef   :  { %v539_v34 = vadd.f32 %v537_v12, %v466_v51  ;;  %v540_v50 = vadd.f32 %v538_v15, %v467_v56  ;;  %v548_v26 = vrot.slane %v475_v29, %v1855_v18  ;;  %v552_v49 = vrot.slane %v476_v24, %v1855_v18 }
  0xf0   :  { %v587_v61 = vadd.f32 %v585_v62, %v523_v55  ;;  %v588_v9 = vadd.f32 %v586_v10, %v524_v63  ;;  %v1700_v28 = vmov 66   ;;  %v607_v40 = vpop.permute.xlu1 %606  ;;  %v489_v57 = vmul.f32 %v484_v8, %v1997_v36 }
  0xf1   :  { %1607 = vset.pattern.permute.xlu1 %v1700_v28  ;;  %v490_v37 = vmul.f32 %v488_v41, %v1997_v36  ;;  %v2060_v47 = vadd.f32 %v601_v52, %v539_v34  ;;  %v2062_v59 = vadd.f32 %v602_v46, %v540_v50  ;;  %v553_v51 = vmul.f32 %v548_v26, %v2014_v13 }
  0xf2   :  { %v554_v56 = vmul.f32 %v552_v49, %v2014_v13  ;;  %1190 = vperm.xlu1 %1607, %v1727_v1   ;;  %v491_v32 = vadd.f32 %v489_v57, %v2021_v38  ;;  %v617_v44 = vmul.f32 %v612_v58, %v607_v40  ;;  %v618_v45 = vmul.f32 %v616_v19, %v607_v40  ;;  %v1621_v40 = vld [vmem:[%s2363_s1] sm:$0xff] }
  0xf3   :  { %v492_v33 = vadd.f32 %v490_v37, %v2023_v39  ;;  %v500_v43 = vrot.slane %v475_v29, %v1862_v22  ;;  %v504_v36 = vrot.slane %v476_v24, %v1862_v22  ;;  %v564_v48 = vrot.slane %v475_v29, %v1864_v23 }
  0xf4   :  { %v568_v62 = vrot.slane %v476_v24, %v1864_v23  ;;  %v555_v10 = vadd.f32 %v553_v51, %v491_v32  ;;  %v1701_v15 = vmov 69   ;;  %v648_v29 = vrot.slane %v1750_v11, %v1868_v27  ;;  %v1622_v32 = vld [vmem:[%s2364_s0] sm:$0xff] }
  0xf5   :  { %v556_v12 = vadd.f32 %v554_v56, %v492_v33  ;;  %v623_v13 = vpop.permute.xlu1 %622  ;;  %v505_v52 = vmul.f32 %v500_v43, %v1991_v31  ;;  %v506_v38 = vmul.f32 %v504_v36, %v1991_v31  ;;  %v569_v39 = vmul.f32 %v564_v48, %v2027_v54 }
  0xf6   :  { %1609 = vset.pattern.permute.xlu1 %v1701_v15  ;;  %v570_v19 = vmul.f32 %v568_v62, %v2027_v54  ;;  %v619_v58 = vadd.f32 %v617_v44, %v555_v10  ;;  %v644_v24 = vrot.slane %v1741_v7, %v1868_v27  ;;  %v633_v31 = vmul.f32 %v628_v6, %v623_v13 }
  0xf7   :  { %v620_v46 = vadd.f32 %v618_v45, %v556_v12  ;;  %1238 = vperm.xlu1 %1609, %v1727_v1   ;;  %v507_v55 = vadd.f32 %v505_v52, %v1993_v53  ;;  %v508_v63 = vadd.f32 %v506_v38, %v1995_v35  ;;  %v634_v54 = vmul.f32 %v632_v0, %v623_v13 }
  0xf8   :  { %v1702_v49 = vmov 67   ;;  %v680_v35 = vrot.slane %v1750_v11, %v1855_v18  ;;  %v676_v6 = vrot.slane %v1741_v7, %v1855_v18  ;;  %v664_v56 = vrot.slane %v1750_v11, %v1860_v21 }
  0xf9   :  { %v571_v8 = vadd.f32 %v569_v39, %v507_v55  ;;  %v572_v1 = vadd.f32 %v570_v19, %v508_v63  ;;  %v660_v33 = vrot.slane %v1622_v32, %v1860_v21  ;;  %v712_v36 = vrot.slane %v1750_v11, %v1872_v30  ;;  %v687_v19 = vpop.permute.xlu0 %686  ;;  %v1623_v11 = vld [vmem:[%s2364_s0 + $0x8] sm:$0xff] }
  0xfa   :  { %v639_v41 = vpop.permute.xlu1 %638  ;;  %v708_v48 = vrot.slane %v1622_v32, %v1872_v30 }
  0xfb   :  { %1146 = vrot.lane.b32.xlu1 %v1741_v7, %s1680_s24  ;;  %v635_v34 = vadd.f32 %v633_v31, %v571_v8  ;;  %v636_v50 = vadd.f32 %v634_v54, %v572_v1  ;;  %v649_v26 = vmul.f32 %v644_v24, %v639_v41  ;;  %v650_v53 = vmul.f32 %v648_v29, %v639_v41 }
  0xfc   :  { %1610 = vset.pattern.permute.xlu1 %v1702_v49  ;;  %v696_v54 = vrot.slane %v1623_v11, %v1864_v23  ;;  %v692_v8 = vrot.slane %v1622_v32, %v1864_v23 }
  0xfd   :  { %v651_v28 = vadd.f32 %v649_v26, %v587_v61  ;;  %v652_v0 = vadd.f32 %v650_v53, %v588_v9  ;;  %v1703_v9 = vmov 71  }
  0xfe   :  { %v697_v41 = vmul.f32 %v692_v8, %v687_v19  ;;  %v698_v26 = vmul.f32 %v696_v54, %v687_v19 }
  0xff   :  { %1206 = vperm.xlu1 %1610, %v1621_v40   ;;  %v671_v57 = vpop.permute.xlu1 %670 }
 0x100   :  { %v681_v37 = vmul.f32 %v676_v6, %v671_v57  ;;  %v682_v51 = vmul.f32 %v680_v35, %v671_v57 }
 0x102   :  { %v683_v7 = vadd.f32 %v681_v37, %v619_v58  ;;  %v684_v61 = vadd.f32 %v682_v51, %v620_v46  ;;  %v728_v58 = vrot.slane %v1623_v11, %v1858_v20  ;;  %v744_v46 = vpop.permute.xlu0 %743 }
 0x103   :  { %1612 = vset.pattern.permute.xlu1 %v1703_v9 }
 0x104   :  { %1270 = vperm.xlu1 %1612, %v1621_v40   ;;  %v655_v44 = vpop.permute.xlu1 %654 }
 0x105   :  { %v665_v45 = vmul.f32 %v660_v33, %v655_v44  ;;  %v666_v43 = vmul.f32 %v664_v56, %v655_v44 }
 0x106   :  { %v776_v31 = vpop.permute.xlu0 %775 }
 0x107   :  { %v667_v62 = vadd.f32 %v665_v45, %v2060_v47  ;;  %v668_v10 = vadd.f32 %v666_v43, %v2062_v59  ;;  %v724_v47 = vrot.slane %v1622_v32, %v1858_v20 }
 0x108   :  { %1614 = vset.pattern.permute.xlu1 %v1627_v4 }
 0x109   :  { %v703_v12 = vpop.permute.xlu1 %702 }
 0x10a   :  { %v713_v15 = vmul.f32 %v708_v48, %v703_v12  ;;  %v714_v13 = vmul.f32 %v712_v36, %v703_v12  ;;  %v734_v53 = vpop.permute.xlu0 %733 }
 0x10c   :  { %v2111_v52 = vadd.f32 %v713_v15, %v651_v28  ;;  %v2113_v38 = vadd.f32 %v714_v13, %v652_v0  ;;  %v699_v28 = vadd.f32 %v697_v41, %v635_v34  ;;  %v700_v0 = vadd.f32 %v698_v26, %v636_v50 }
 0x10e   :  { %v760_v39 = vpop.permute.xlu1 %759  ;;  %v792_v54 = vpop.permute.xlu0 %791 }
 0x113   :  { %v719_v59 = vpop.permute.xlu1 %718 }
 0x114   :  { %v729_v4 = vmul.f32 %v724_v47, %v719_v59  ;;  %v730_v29 = vmul.f32 %v728_v58, %v719_v59 }
 0x116   :  { %v731_v24 = vadd.f32 %v729_v4, %v667_v62  ;;  %v732_v55 = vadd.f32 %v730_v29, %v668_v10 }
 0x118   :  { %v808_v63 = vpop.permute.xlu1 %807 }
 0x11d   :  { %v824_v1 = vpop.permute.xlu1 %823 }
 0x121   :  { %v736_v49 = vpop.permute.xlu1 %735 }
 0x122   :  { %v738_v35 = vsel %vm737_vm11, %v734_v53, %v736_v49  ;;  %v739_v6 = vsel %vm737_vm11, %v736_v49, %v734_v53 }
 0x123   :  { %v740_v40 = vsel %vm1960_vm6, %v738_v35, 0.0  ;;  %v741_v57 = vsel %vm1967_vm8, %v739_v6, 0.0 }
 0x124   :  { %v749_v37 = vrot.slane %v740_v40, %v1853_v17  ;;  %v753_v51 = vrot.slane %v741_v57, %v1853_v17  ;;  %v765_v56 = vrot.slane %v740_v40, %v1862_v22  ;;  %v769_v32 = vrot.slane %v741_v57, %v1862_v22 }
 0x125   :  { %v813_v33 = vrot.slane %v740_v40, %v1855_v18  ;;  %v817_v9 = vrot.slane %v741_v57, %v1855_v18  ;;  %v829_v34 = vrot.slane %v740_v40, %v1864_v23  ;;  %v833_v50 = vrot.slane %v741_v57, %v1864_v23  ;;  %v840_v44 = vpop.permute.xlu1 %839 }
 0x126   :  { %v754_v45 = vmul.f32 %v749_v37, %v744_v46  ;;  %v755_v43 = vmul.f32 %v753_v51, %v744_v46  ;;  %v770_v36 = vmul.f32 %v765_v56, %v760_v39  ;;  %v771_v48 = vmul.f32 %v769_v32, %v760_v39 }
 0x127   :  { %v818_v62 = vmul.f32 %v813_v33, %v808_v63  ;;  %v819_v10 = vmul.f32 %v817_v9, %v808_v63  ;;  %v834_v12 = vmul.f32 %v829_v34, %v824_v1  ;;  %v835_v15 = vmul.f32 %v833_v50, %v824_v1 }
 0x128   :  { %v756_v13 = vadd.f32 %v754_v45, %v683_v7  ;;  %v757_v19 = vadd.f32 %v755_v43, %v684_v61  ;;  %v772_v11 = vadd.f32 %v770_v36, %v699_v28  ;;  %v773_v58 = vadd.f32 %v771_v48, %v700_v0 }
 0x129   :  { %v781_v47 = vrot.slane %v740_v40, %v1868_v27  ;;  %v785_v59 = vrot.slane %v741_v57, %v1868_v27  ;;  %v845_v4 = vrot.slane %v740_v40, %v1872_v30  ;;  %v849_v29 = vrot.slane %v741_v57, %v1872_v30 }
 0x12a   :  { %v797_v46 = vrot.slane %v740_v40, %v1860_v21  ;;  %v801_v39 = vrot.slane %v741_v57, %v1860_v21  ;;  %v883_v63 = vpop.permute.xlu1 %882  ;;  %v821_v53 = vadd.f32 %v819_v10, %v757_v19  ;;  %v2141_v49 = vadd.f32 %v835_v15, %v773_v58 }
 0x12b   :  { %v786_v8 = vmul.f32 %v781_v47, %v776_v31  ;;  %v787_v1 = vmul.f32 %v785_v59, %v776_v31  ;;  %v850_v7 = vmul.f32 %v845_v4, %v840_v44  ;;  %v851_v61 = vmul.f32 %v849_v29, %v840_v44  ;;  %v899_v44 = vpop.permute.xlu0 %898 }
 0x12c   :  { %v802_v41 = vmul.f32 %v797_v46, %v792_v54  ;;  %v803_v26 = vmul.f32 %v801_v39, %v792_v54  ;;  %v820_v28 = vadd.f32 %v818_v62, %v756_v13  ;;  %v2145_v0 = vadd.f32 %v834_v12, %v772_v11 }
 0x12d   :  { %v788_v35 = vadd.f32 %v786_v8, %v2111_v52  ;;  %v789_v6 = vadd.f32 %v787_v1, %v2113_v38  ;;  %v861_v56 = vrot.slane %v740_v40, %v1858_v20  ;;  %v865_v31 = vrot.slane %v741_v57, %v1858_v20 }
 0x12e   :  { %v804_v37 = vadd.f32 %v802_v41, %v731_v24  ;;  %v805_v51 = vadd.f32 %v803_v26, %v732_v55 }
 0x12f   :  { %v852_v32 = vadd.f32 %v850_v7, %v788_v35  ;;  %v2149_v33 = vadd.f32 %v851_v61, %v789_v6  ;;  %v856_v9 = vpop.permute.xlu1 %855  ;;  %v2155_v43 = vpop.permute.xlu0 %946 }
 0x130   :  { %v866_v34 = vmul.f32 %v861_v56, %v856_v9  ;;  %v867_v50 = vmul.f32 %v865_v31, %v856_v9 }
 0x132   :  { %v2151_v45 = vadd.f32 %v866_v34, %v804_v37  ;;  %v2153_v52 = vadd.f32 %v867_v50, %v805_v51 }
 0x133   :  { %v873_v55 = vpop.permute.xlu0 %872 }
 0x135   :  { %v915_v38 = vpop.permute.xlu1 %914 }
 0x137   :  { %v979_v4 = vpop.permute.xlu0 %978 }
 0x13a   :  { %v2157_v24 = vpop.permute.xlu1 %962 }
 0x13b   :  { %v995_v46 = vpop.permute.xlu0 %994 }
 0x13e   :  { %v871_v40 = vpop.permute.xlu1 %870 }
 0x13f   :  { %v875_v57 = vsel %vm874_vm13, %v871_v40, %v873_v55  ;;  %v876_v36 = vsel %vm874_vm13, %v873_v55, %v871_v40  ;;  %v2191_v1 = vpop.permute.xlu0 %1099 }
 0x140   :  { %v2167_v48 = vsel %vm1837_vm1, %v875_v57, 0.0  ;;  %v2169_v62 = vsel %vm878_vm14, %v876_v36, 0.0  ;;  %vm1154_vm1 = vmand %vm46_vm12, %vm1967_vm8 }
 0x141   :  { %v892_v10 = vrot.slane %v2169_v62, %v1853_v17  ;;  %v888_v16 = vrot.slane %v2167_v48, %v1853_v17  ;;  %v920_v39 = vrot.slane %v2167_v48, %v1868_v27  ;;  %v908_v7 = vrot.slane %v2169_v62, %v1862_v22 }
 0x142   :  { %v931_v12 = vpop.permute.xlu1 %930  ;;  %v936_v61 = vrot.slane %v2167_v48, %v1860_v21  ;;  %v940_v26 = vrot.slane %v2169_v62, %v1860_v21  ;;  %v984_v37 = vrot.slane %v2167_v48, %v1872_v30  ;;  %v988_v51 = vrot.slane %v2169_v62, %v1872_v30 }
 0x143   :  { %v894_v15 = vmul.f32 %v892_v10, %v883_v63  ;;  %v893_v13 = vmul.f32 %v888_v16, %v883_v63  ;;  %v924_v63 = vrot.slane %v2169_v62, %v1868_v27  ;;  %v925_v41 = vmul.f32 %v920_v39, %v915_v38  ;;  %v1068_v10 = vpop.permute.xlu0 %1067 }
 0x144   :  { %v1000_v56 = vrot.slane %v2167_v48, %v1858_v20  ;;  %v1004_v31 = vrot.slane %v2169_v62, %v1858_v20  ;;  %v910_v9 = vmul.f32 %v908_v7, %v899_v44  ;;  %v952_v34 = vrot.slane %v2167_v48, %v1855_v18 }
 0x145   :  { %v2177_v11 = vadd.f32 %v894_v15, %v821_v53  ;;  %v2179_v58 = vadd.f32 %v893_v13, %v820_v28  ;;  %v904_v53 = vrot.slane %v2167_v48, %v1862_v22  ;;  %v926_v35 = vmul.f32 %v924_v63, %v915_v38 }
 0x146   :  { %v956_v50 = vrot.slane %v2169_v62, %v1855_v18  ;;  %v941_v38 = vmul.f32 %v936_v61, %v931_v12  ;;  %v927_v55 = vadd.f32 %v925_v41, %v852_v32  ;;  %v942_v40 = vmul.f32 %v940_v26, %v931_v12 }
 0x147   :  { %v2175_v19 = vpop.permute.xlu1 %1019  ;;  %v909_v16 = vmul.f32 %v904_v53, %v899_v44  ;;  %v968_v15 = vrot.slane %v2167_v48, %v1864_v23  ;;  %v972_v13 = vrot.slane %v2169_v62, %v1864_v23  ;;  %v928_v39 = vadd.f32 %v926_v35, %v2149_v33  ;;  %v2240_v33 = vpop.permute.xlu0 %1174 }
 0x148   :  { %v989_v32 = vmul.f32 %v984_v37, %v979_v4  ;;  %v990_v12 = vmul.f32 %v988_v51, %v979_v4  ;;  %v1005_v63 = vmul.f32 %v1000_v56, %v995_v46  ;;  %v1006_v7 = vmul.f32 %v1004_v31, %v995_v46 }
 0x149   :  { %v912_v48 = vadd.f32 %v910_v9, %v2141_v49  ;;  %v944_v62 = vadd.f32 %v942_v40, %v2153_v52  ;;  %v957_v4 = vmul.f32 %v952_v34, %v2155_v43  ;;  %v958_v46 = vmul.f32 %v956_v50, %v2155_v43 }
 0x14a   :  { %v991_v41 = vadd.f32 %v989_v32, %v927_v55  ;;  %v992_v26 = vadd.f32 %v990_v12, %v928_v39  ;;  %v973_v53 = vmul.f32 %v968_v15, %v2157_v24  ;;  %v911_v35 = vadd.f32 %v909_v16, %v2145_v0 }
 0x14b   :  { %v974_v31 = vmul.f32 %v972_v13, %v2157_v24  ;;  %v1008_v34 = vadd.f32 %v1006_v7, %v944_v62  ;;  %v2269_v32 = vpop.permute.xlu0 %1222 }
 0x14c   :  { %v2181_v14 = vpop.permute.xlu1 %1035  ;;  %v975_v16 = vadd.f32 %v973_v53, %v911_v35 }
 0x14d   :  { %v976_v62 = vadd.f32 %v974_v31, %v912_v48 }
 0x151   :  { %v1052_v47 = vpop.permute.xlu1 %1051 }
 0x156   :  { %v2183_v59 = vpop.permute.xlu1 %1083 }
 0x15a   :  { %v1010_v29 = vpop.permute.xlu1 %1009 }
 0x15e   :  { %v1012_v54 = vpop.permute.xlu1 %1011 }
 0x15f   :  { %v1015_v6 = vsel %vm1013_vm15, %v1012_v54, %v1010_v29  ;;  %v2220_v57 = vsel %vm1013_vm15, %v1010_v29, %v1012_v54  ;;  %v943_v54 = vadd.f32 %v941_v38, %v2151_v45  ;;  %v960_v38 = vadd.f32 %v958_v46, %v2177_v11 }
 0x160   :  { %v2224_v36 = vsel %vm46_vm12, %v1015_v6, 0.0  ;;  %v1057_v61 = vrot.slane %v2220_v57, %v1868_v27  ;;  %v1025_v49 = vrot.slane %v2220_v57, %v1853_v17  ;;  %v1041_v52 = vrot.slane %v2220_v57, %v1862_v22 }
 0x161   :  { %v1061_v44 = vrot.slane %v2224_v36, %v1868_v27  ;;  %v1029_v45 = vrot.slane %v2224_v36, %v1853_v17  ;;  %v1073_v6 = vrot.slane %v2220_v57, %v1860_v21  ;;  %v1077_v43 = vrot.slane %v2224_v36, %v1860_v21 }
 0x162   :  { %v2187_v8 = vpop.permute.xlu1 %1115  ;;  %v1062_v37 = vmul.f32 %v1057_v61, %v1052_v47  ;;  %v1121_v56 = vrot.slane %v2220_v57, %v1872_v30  ;;  %v1007_v9 = vadd.f32 %v1005_v63, %v943_v54  ;;  %v1045_v50 = vrot.slane %v2224_v36, %v1862_v22 }
 0x163   :  { %v1063_v51 = vmul.f32 %v1061_v44, %v1052_v47  ;;  %v1125_v55 = vrot.slane %v2224_v36, %v1872_v30  ;;  %v1031_v40 = vmul.f32 %v1029_v45, %v2175_v19  ;;  %v959_v47 = vadd.f32 %v957_v4, %v2179_v58 }
 0x164   :  { %v1078_v15 = vmul.f32 %v1073_v6, %v1068_v10  ;;  %v1079_v39 = vmul.f32 %v1077_v43, %v1068_v10  ;;  %v1030_v24 = vmul.f32 %v1025_v49, %v2175_v19  ;;  %v1046_v13 = vmul.f32 %v1041_v52, %v2181_v14  ;;  %v1149_v52 = vpop.permute.xlu0 %1148 }
 0x165   :  { %v1064_v12 = vadd.f32 %v1062_v37, %v991_v41  ;;  %v1065_v63 = vadd.f32 %v1063_v51, %v992_v26  ;;  %v1126_v11 = vmul.f32 %v1121_v56, %v2187_v8  ;;  %v1093_v7 = vrot.slane %v2224_v36, %v1855_v18 }
 0x166   :  { %v1047_v58 = vmul.f32 %v1045_v50, %v2181_v14  ;;  %v1089_v10 = vrot.slane %v2220_v57, %v1855_v18  ;;  %v1105_v61 = vrot.slane %v2220_v57, %v1864_v23  ;;  %v1109_v19 = vrot.slane %v2224_v36, %v1864_v23 }
 0x167   :  { %v2204_v28 = vpop.permute.xlu1 %1158  ;;  %v1127_v44 = vmul.f32 %v1125_v55, %v2187_v8  ;;  %v1137_v41 = vrot.slane %v2220_v57, %v1858_v20  ;;  %v1033_v4 = vadd.f32 %v1031_v40, %v960_v38  ;;  %v1080_v46 = vadd.f32 %v1078_v15, %v1007_v9 }
 0x168   :  { %v1141_v14 = vrot.slane %v2224_v36, %v1858_v20  ;;  %v1032_v26 = vadd.f32 %v1030_v24, %v959_v47  ;;  %v1048_v45 = vadd.f32 %v1046_v13, %v975_v16  ;;  %v1081_v53 = vadd.f32 %v1079_v39, %v1008_v34 }
 0x169   :  { %v1128_v35 = vadd.f32 %v1126_v11, %v1064_v12  ;;  %v1129_v49 = vadd.f32 %v1127_v44, %v1065_v63  ;;  %v1095_v8 = vmul.f32 %v1093_v7, %v2183_v59  ;;  %v1049_v48 = vadd.f32 %v1047_v58, %v976_v62 }
 0x16a   :  { %v1094_v6 = vmul.f32 %v1089_v10, %v2183_v59  ;;  %v1110_v43 = vmul.f32 %v1105_v61, %v2191_v1  ;;  %v1111_v36 = vmul.f32 %v1109_v19, %v2191_v1  ;;  %v1255_v61 = vpop.permute.xlu0 %1254 }
 0x16b   :  { %v1097_v25 = vadd.f32 %v1095_v8, %v1033_v4 }
 0x16c   :  { %v2231_v29 = vpop.permute.xlu1 %1131  ;;  %v1096_v9 = vadd.f32 %v1094_v6, %v1032_v26  ;;  %v1112_v34 = vadd.f32 %v1110_v43, %v1048_v45  ;;  %v1113_v39 = vadd.f32 %v1111_v36, %v1049_v48 }
 0x16d   :  { %v1142_v37 = vmul.f32 %v1137_v41, %v2231_v29  ;;  %v1143_v16 = vmul.f32 %v1141_v14, %v2231_v29 }
 0x16f   :  { %v1144_v15 = vadd.f32 %v1142_v37, %v1080_v46  ;;  %v1145_v48 = vadd.f32 %v1143_v16, %v1081_v53 }
 0x171   :  { %v2259_v0 = vpop.permute.xlu1 %1190 }
 0x176   :  { %v2276_v54 = vpop.permute.xlu1 %1238 }
 0x17a   :  { %v1147_v57 = vpop.permute.xlu1 %1146 }
 0x17b   :  { %v1151_v51 = vsel %vm1150_vm0, %v1147_v57, %v1149_v52  ;;  %v1152_v3 = vsel %vm1150_vm0, %v1149_v52, %v1147_v57 }
 0x17c   :  { %v1155_v56 = vsel %vm1960_vm6, %v1151_v51, 0.0  ;;  %v1156_v31 = vsel %vm1154_vm1, %v1152_v3, 0.0 }
 0x17d   :  { %v1212_v59 = vrot.slane %v1155_v56, %v1860_v21  ;;  %v1216_v50 = vrot.slane %v1156_v31, %v1860_v21  ;;  %v1164_v1 = vrot.slane %v1155_v56, %v1853_v17  ;;  %v1168_v38 = vrot.slane %v1156_v31, %v1853_v17 }
 0x17e   :  { %v1207_v55 = vpop.permute.xlu1 %1206  ;;  %v1180_v40 = vrot.slane %v1155_v56, %v1862_v22  ;;  %v1184_v60 = vrot.slane %v1156_v31, %v1862_v22  ;;  %v1196_v47 = vrot.slane %v1155_v56, %v1868_v27  ;;  %v1200_v42 = vrot.slane %v1156_v31, %v1868_v27 }
 0x17f   :  { %v1170_v24 = vmul.f32 %v1168_v38, %v2204_v28  ;;  %v1217_v21 = vmul.f32 %v1212_v59, %v1207_v55  ;;  %v1169_v13 = vmul.f32 %v1164_v1, %v2204_v28  ;;  %v1218_v63 = vmul.f32 %v1216_v50, %v1207_v55 }
 0x180   :  { %v1185_v17 = vmul.f32 %v1180_v40, %v2240_v33  ;;  %v1186_v12 = vmul.f32 %v1184_v60, %v2240_v33  ;;  %v1201_v22 = vmul.f32 %v1196_v47, %v2259_v0  ;;  %v1202_v11 = vmul.f32 %v1200_v42, %v2259_v0 }
 0x181   :  { %v1228_v27 = vrot.slane %v1155_v56, %v1855_v18  ;;  %v1172_v7 = vadd.f32 %v1170_v24, %v1097_v25  ;;  %v1232_v58 = vrot.slane %v1156_v31, %v1855_v18  ;;  %v1244_v10 = vrot.slane %v1155_v56, %v1864_v23 }
 0x182   :  { %v1188_v29 = vadd.f32 %v1186_v12, %v1113_v39  ;;  %v1248_v19 = vrot.slane %v1156_v31, %v1864_v23  ;;  %v1260_v33 = vrot.slane %v1155_v56, %v1872_v30  ;;  %v1264_v44 = vrot.slane %v1156_v31, %v1872_v30 }
 0x183   :  { %v1233_v28 = vmul.f32 %v1228_v27, %v2269_v32  ;;  %v1234_v41 = vmul.f32 %v1232_v58, %v2269_v32  ;;  %v1249_v0 = vmul.f32 %v1244_v10, %v2276_v54  ;;  %v1171_v62 = vadd.f32 %v1169_v13, %v1096_v9  ;;  %v1271_v45 = vpop.permute.xlu1 %1270 }
 0x184   :  { %v1187_v4 = vadd.f32 %v1185_v17, %v1112_v34  ;;  %v1204_v46 = vadd.f32 %v1202_v11, %v1129_v49  ;;  %v1250_v18 = vmul.f32 %v1248_v19, %v2276_v54  ;;  %v1203_v14 = vadd.f32 %v1201_v22, %v1128_v35 }
 0x185   :  { %v1265_v26 = vmul.f32 %v1260_v33, %v1255_v61  ;;  %v1236_v8 = vadd.f32 %v1234_v41, %v1172_v7  ;;  %v1235_v52 = vadd.f32 %v1233_v28, %v1171_v62  ;;  %v1276_v23 = vrot.slane %v1155_v56, %v1858_v20 }
 0x186   :  { %v1251_v57 = vadd.f32 %v1249_v0, %v1187_v4  ;;  %v1252_v6 = vadd.f32 %v1250_v18, %v1188_v29  ;;  %v1266_v30 = vmul.f32 %v1264_v44, %v1255_v61  ;;  %v1280_v32 = vrot.slane %v1156_v31, %v1858_v20 }
 0x187   :  { %v1219_v43 = vadd.f32 %v1217_v21, %v1144_v15  ;;  %v1267_v36 = vadd.f32 %v1265_v26, %v1203_v14  ;;  %v1281_v51 = vmul.f32 %v1276_v23, %v1271_v45  ;;  %v1220_v49 = vadd.f32 %v1218_v63, %v1145_v48 }
 0x188   :  { %v1285_v37 = vadd.f32 %v1251_v57, %v1235_v52  ;;  %v1286_v3 = vadd.f32 %v1252_v6, %v1236_v8  ;;  %v1268_v54 = vadd.f32 %v1266_v30, %v1204_v46  ;;  %v1282_v35 = vmul.f32 %v1280_v32, %v1271_v45 }
 0x189   :  { %v1283_v9 = vadd.f32 %v1281_v51, %v1219_v43 }
 0x18a   :  { %v1287_v25 = vadd.f32 %v1285_v37, %v1267_v36  ;;  %v1288_v34 = vadd.f32 %v1286_v3, %v1268_v54  ;;  %v1284_v59 = vadd.f32 %v1282_v35, %v1220_v49  ;;  %v1291_v36 = vld [vmem:[%s2365_s2] sm:$0xf] }
 0x18c   :  { %v1289_v50 = vadd.f32 %v1287_v25, %v1283_v9  ;;  %v1290_v56 = vadd.f32 %v1288_v34, %v1284_v59 }
 0x18e   :  { %v1293_v53 = vsel %vm1292_vm2, %v1289_v50, 0.0  ;;  %v1294_v1 = vsel %vm1292_vm2, %v1290_v56, 0.0  ;;  %v1360_v13 = vrot.slane %v1289_v50, 4  ;;  %v1361_v17 = vrot.slane %v1290_v56, 4 }
 0x18f   :  { %v1295_v20 = vadd.f32 %v1294_v1, %v1293_v53 }
 0x190   :  { %v1364_v11 = vsel %vm1292_vm2, %v1360_v13, 0.0  ;;  %v1365_v27 = vsel %vm1292_vm2, %v1361_v17, 0.0 }
 0x191   :  { %1296 = vadd.xlane.f32.xlu1 %v1295_v20  ;;  %v1366_v7 = vadd.f32 %v1365_v27, %v1364_v11 }
 0x21e   :  { %v1297_v31 = vpop.xlane.xlu1 %1296 }
 0x21f   :  { %v1298_v38 = vrot.slane %v1297_v31, 4 }
 0x221   :  { %v1299_v55 = vadd.f32 %v1298_v38, %v1297_v31 }
 0x223   :  { %v1300_v40 = vrot.slane %v1299_v55, 2 }
 0x225   :  { %v1301_v60 = vadd.f32 %v1300_v40, %v1299_v55 }
 0x227   :  { %v1302_v47 = vrot.slane %v1301_v60, 1 }
 0x229   :  { %v1303_v42 = vadd.f32 %v1302_v47, %v1301_v60 }
 0x22b   :  { %1449 = vpush %v1303_v42 }
 0x25c   :  { %s1450_s0 = spop %1449 }
 0x25d   :  { %s1307_s4 = smul.f32 0.0009765625, %s1450_s0 }
 0x25f   :  { %v1308_v16 = vstv %s1307_s4 }
 0x260   :  { %v2334_v15 = vsub.f32 %v1289_v50, %v1308_v16  ;;  %v2336_v39 = vsub.f32 %v1290_v56, %v1308_v16 }
 0x262   :  { %v1311_v24 = vmul.f32 %v2334_v15, %v2334_v15  ;;  %v1312_v21 = vmul.f32 %v2336_v39, %v2336_v39 }
 0x264   :  { %v1313_v12 = vsel %vm1292_vm2, %v1311_v24, 0.0  ;;  %v1314_v63 = vsel %vm1292_vm2, %v1312_v21, 0.0 }
 0x265   :  { %v1315_v22 = vadd.f32 %v1314_v63, %v1313_v12 }
 0x267   :  { %1316 = vadd.xlane.f32.xlu0 %v1315_v22 }
 0x26b   :  { %1367 = vadd.xlane.f32.xlu0 %v1366_v7 }
 0x2f4   :  { %v1317_v29 = vpop.xlane.xlu0 %1316 }
 0x2f5   :  { %v1318_v58 = vrot.slane %v1317_v29, 4 }
 0x2f7   :  { %v1319_v10 = vadd.f32 %v1318_v58, %v1317_v29 }
 0x2f8   :  { %v1368_v44 = vpop.xlane.xlu0 %1367 }
 0x2f9   :  { %v1320_v61 = vrot.slane %v1319_v10, 2  ;;  %v1369_v41 = vrot.slane %v1368_v44, 4 }
 0x2fb   :  { %v1321_v28 = vadd.f32 %v1320_v61, %v1319_v10  ;;  %v1370_v0 = vadd.f32 %v1369_v41, %v1368_v44 }
 0x2fd   :  { %v1322_v19 = vrot.slane %v1321_v28, 1  ;;  %v1371_v62 = vrot.slane %v1370_v0, 2 }
 0x2ff   :  { %v1323_v33 = vadd.f32 %v1322_v19, %v1321_v28  ;;  %v1372_v46 = vadd.f32 %v1371_v62, %v1370_v0 }
 0x301   :  { %1451 = vpush %v1323_v33  ;;  %v1373_v18 = vrot.slane %v1372_v46, 1 }
 0x303   :  { %v1374_v26 = vadd.f32 %v1373_v18, %v1372_v46 }
 0x332   :  { %s1452_s5 = spop %1451 }
 0x333   :  { %s1327_s6 = smul.f32 0.0009765625, %s1452_s5 }
 0x335   :  { %s1328_s7 = sadd.f32 1e-05, %s1327_s6 }
 0x337   :  { %v1329_v4 = vstv %s1328_s7 }
 0x338   :  { %1617 = vrsqrt.f32 %v1329_v4 }
 0x342   :  { %v1618_v14 = vpop.eup %1617 }
 0x343   :  { %1453 = vpush %v1618_v14 }
 0x344   :  { %1455 = vpush %v1374_v26 }
 0x374   :  { %s1454_s8 = spop %1453 }
 0x375   :  { %s1456_s9 = spop %1455  ;;  %v1332_v37 = vstv %s1454_s8 }
 0x376   :  { %s1378_s10 = smul.f32 0.0009765625, %s1456_s9  ;;  %v1333_v51 = vmul.f32 %v1332_v37, %v1291_v36 }
 0x378   :  { %v1379_v45 = vstv %s1378_s10 }
 0x379   :  { %v1380_v8 = vsub.f32 %v1289_v50, %v1379_v45  ;;  %v1381_v52 = vsub.f32 %v1290_v56, %v1379_v45 }
 0x37b   :  { %v1382_v57 = vmul.f32 %v1380_v8, %v1380_v8  ;;  %v1383_v23 = vmul.f32 %v1381_v52, %v1381_v52 }
 0x37d   :  { %v1386_v48 = vrot.slane %v1382_v57, 4  ;;  %v1387_v6 = vrot.slane %v1383_v23, 4 }
 0x37f   :  { %v1390_v30 = vsel %vm1292_vm2, %v1386_v48, 0.0  ;;  %v1391_v32 = vsel %vm1292_vm2, %v1387_v6, 0.0 }
 0x380   :  { %v1392_v43 = vadd.f32 %v1391_v32, %v1390_v30 }
 0x382   :  { %1393 = vadd.xlane.f32.xlu1 %v1392_v43 }
 0x393   :  { %1343 = vperm.xlu1 %1614, %v1291_v36  }
 0x397   :  { %1615 = vset.pattern.permute.xlu1 %v1625_v2 }
 0x398   :  { %1336 = vperm.xlu1 %1615, %v1333_v51  }
 0x39c   :  { %1616 = vset.pattern.permute.xlu1 %v1628_v5 }
 0x39d   :  { %1351 = vperm.xlu1 %1616, %v1291_v36  }
 0x40f   :  { %v1394_v49 = vpop.xlane.xlu1 %1393 }
 0x410   :  { %v1395_v3 = vrot.slane %v1394_v49, 4 }
 0x412   :  { %v1396_v54 = vadd.f32 %v1395_v3, %v1394_v49 }
 0x413   :  { %v1344_v5 = vpop.permute.xlu1 %1343 }
 0x414   :  { %v1397_v35 = vrot.slane %v1396_v54, 2  ;;  %v1419_v55 = vrot.slane %v1344_v5, 4 }
 0x416   :  { %v1398_v25 = vadd.f32 %v1397_v35, %v1396_v54 }
 0x417   :  { %v1337_v53 = vpop.permute.xlu1 %1336 }
 0x418   :  { %v1399_v9 = vrot.slane %v1398_v25, 1  ;;  %v1339_v20 = vmul.f32 %v1337_v53, %v2334_v15  ;;  %v1340_v31 = vmul.f32 %v1337_v53, %v2336_v39 }
 0x41a   :  { %v1400_v34 = vadd.f32 %v1399_v9, %v1398_v25  ;;  %v1346_v47 = vadd.f32 %v1344_v5, %v1339_v20  ;;  %v1347_v42 = vadd.f32 %v1344_v5, %v1340_v31 }
 0x41c   :  { %1457 = vpush %v1400_v34  ;;  %v1352_v21 = vpop.permute.xlu1 %1351  ;;  %vm1348_vm3 = vcmp.gt.f32.partialorder %v1346_v47, 0.0  ;;  %vm1349_vm4 = vcmp.gt.f32.partialorder %v1347_v42, 0.0 }
 0x41d   :  { %v1354_v12 = vmul.f32 %v1352_v21, %v1346_v47  ;;  %v1355_v63 = vmul.f32 %v1352_v21, %v1347_v42 }
 0x41f   :  { %v1356_v15 = vsel %vm1348_vm3, %v1346_v47, %v1354_v12  ;;  %v1357_v39 = vsel %vm1349_vm4, %v1347_v42, %v1355_v63 }
 0x44d   :  { %s1458_s13 = spop %1457 }
 0x44e   :  { %s1404_s14 = smul.f32 0.0009765625, %s1458_s13 }
 0x450   :  { %s1405_s2 = sadd.f32 1e-05, %s1404_s14 }
 0x452   :  { %v1406_v59 = vstv %s1405_s2 }
 0x453   :  { %1619 = vrsqrt.f32 %v1406_v59 }
 0x45d   :  { %v1620_v50 = vpop.eup %1619 }
 0x45e   :  { %1459 = vpush %v1620_v50 }
 0x48f   :  { %s1460_s15 = spop %1459 }
 0x490   :  { %v1409_v2 = vstv %s1460_s15 }
 0x491   :  { %v1410_v56 = vmul.f32 %v1409_v2, %v1291_v36 }
 0x493   :  { %1413 = vperm.xlu0 %1613, %v1410_v56  }
 0x512   :  { %v1414_v1 = vpop.permute.xlu0 %1413 }
 0x513   :  { %v1415_v38 = vrot.slane %v1414_v1, 4 }
 0x515   :  { %v1417_v40 = vmul.f32 %v1415_v38, %v1380_v8  ;;  %v1418_v60 = vmul.f32 %v1415_v38, %v1381_v52 }
 0x517   :  { %v1421_v16 = vadd.f32 %v1419_v55, %v1417_v40  ;;  %v1422_v24 = vadd.f32 %v1419_v55, %v1418_v60 }
 0x519   :  { %v1427_v13 = vrot.slane %v1421_v16, 4  ;;  %v1428_v17 = vrot.slane %v1422_v24, 4  ;;  %vm1423_vm5 = vcmp.gt.f32.partialorder %v1421_v16, 0.0  ;;  %vm1424_vm6 = vcmp.gt.f32.partialorder %v1422_v24, 0.0 }
 0x51b   :  { %v1431_v22 = vmul.f32 %v1427_v13, %v1352_v21  ;;  %v1432_v11 = vmul.f32 %v1428_v17, %v1352_v21 }
 0x51d   :  { %v1435_v27 = vrot.slane %v1431_v22, 4  ;;  %v1436_v7 = vrot.slane %v1432_v11, 4 }
 0x51f   :  { %v1439_v29 = vsel %vm1423_vm5, %v1421_v16, %v1435_v27  ;;  %v1440_v58 = vsel %vm1424_vm6, %v1422_v24, %v1436_v7 }
 0x520   :  { %v1441_v10 = vsel %vm1292_vm2, %v1356_v15, %v1439_v29  ;;  %v1442_v61 = vsel %vm1292_vm2, %v1357_v39, %v1440_v58 }
 0x521   :  { %1443 = vst [vmem:[%s2366_s3] sm:$0xff] %v1441_v10  ;;  %1444 = vst [vmem:[%s2366_s3 + $0x8] sm:$0xff] %v1442_v61 }

</bundles_post_ra>
